<compile_context>
chip_gen: v6e
topology: v6e:2x2x1
jax: 0.10.0
libtpu: 0.0.40
codegen_flags: <defaults>
</compile_context>

<pallas_src>
import math

import jax
import jax.numpy as jnp
from jax.experimental import pallas as pl
from jax.experimental.pallas import tpu as pltpu

# ----------------------- small Gemma config -----------------------
HIDDEN = 32
NUM_HEADS = 4
NUM_KV_HEADS = 2
HEAD_DIM = 16
INTERMEDIATE = 64
SEQ = 16            # two query tiles -> exercises the multi-tile causal path
TQ = 8              # query-token tile (grid step)
RMS_EPS = 1e-6
ROPE_THETA = 10000.0

Q_SIZE = NUM_HEADS * HEAD_DIM           # 64
KV_SIZE = NUM_KV_HEADS * HEAD_DIM       # 32
QKV_SIZE = Q_SIZE + 2 * KV_SIZE         # 128 (lane-dense qkv slab)
GROUP = NUM_HEADS // NUM_KV_HEADS       # 2
HALF = HEAD_DIM // 2


# ----------------------- in-kernel helpers -----------------------
def _rmsnorm(x, w):
    # GemmaRMSNorm: x * rsqrt(mean(x^2)+eps) * (1 + w), f32 math
    var = jnp.mean(x * x, axis=-1, keepdims=True)
    return x * jax.lax.rsqrt(var + RMS_EPS) * (1.0 + w)


def _rope(x, cos, sin):
    # neox rotary with full-width (duplicated-half) cos/sin tables:
    #   out = x * cos + rotate_half(x) * sin ,  rotate_half(x) = [-x2, x1]
    x1 = x[..., :HALF]
    x2 = x[..., HALF:]
    rot = jnp.concatenate([-x2, x1], axis=-1)
    return x * cos + rot * sin


# ----------------------- single fused kernel (per query tile) -----------------------
def _make_kernel(has_residual: bool, t_total: int, tq: int):
    f32 = jnp.float32
    bf16 = jnp.bfloat16

    def kernel(*refs):
        if has_residual:
            (hid_ref, res_ref, w_in_ref, w_post_ref, qkv_w_ref, o_w_ref,
             gu_w_ref, down_w_ref, cos_ref, sin_ref,
             out_ref, res_out_ref, q_sc, k_cache, v_cache) = refs
        else:
            (hid_ref, w_in_ref, w_post_ref, qkv_w_ref, o_w_ref,
             gu_w_ref, down_w_ref, cos_ref, sin_ref,
             out_ref, res_out_ref, q_sc, k_cache, v_cache) = refs
            res_ref = None

        i = pl.program_id(0)

        # Zero the persistent K/V scratch once per call so not-yet-written
        # (causally masked) rows can never contain NaN/Inf garbage.
        @pl.when(i == 0)
        def _():
            k_cache[...] = jnp.zeros_like(k_cache)
            v_cache[...] = jnp.zeros_like(v_cache)

        # ---- input_layernorm (+ fused residual add), f32 VPU math ----
        x = hid_ref[...].astype(f32)
        if has_residual:
            x = x + res_ref[...].astype(f32)
        h = _rmsnorm(x, w_in_ref[...].astype(f32))

        # ---- qkv projection: one lane-dense [tq, 128] slab, bf16 MXU, f32 acc ----
        qkv = jnp.dot(h.astype(bf16), qkv_w_ref[...],
                      preferred_element_type=f32)

        cos = cos_ref[...]                       # [tq, D] f32 (duplicated halves)
        sin = sin_ref[...]

        # ---- RoPE (per head, f32) + head-major staging ----
        # q -> per-tile scratch grouped by kv head; k/v -> persistent cache at
        # this tile's row offset (sublane-aligned: tq == 8).
        kv_off = pl.multiple_of(i * tq, tq)
        for kvh in range(NUM_KV_HEADS):
            for g in range(GROUP):
                hh = kvh * GROUP + g
                qh = _rope(qkv[:, hh * HEAD_DIM:(hh + 1) * HEAD_DIM], cos, sin)
                q_sc[kvh, g * tq:(g + 1) * tq, :] = qh
            kh = _rope(qkv[:, Q_SIZE + kvh * HEAD_DIM:
                           Q_SIZE + (kvh + 1) * HEAD_DIM], cos, sin)
            k_cache[kvh, pl.ds(kv_off, tq), :] = kh
            v_cache[kvh, pl.ds(kv_off, tq), :] = (
                qkv[:, Q_SIZE + KV_SIZE + kvh * HEAD_DIM:
                    Q_SIZE + KV_SIZE + (kvh + 1) * HEAD_DIM])

        # ---- batched GQA causal attention over all cached tokens ----
        scale = HEAD_DIM ** -0.5
        s = jax.lax.dot_general(
            q_sc[...].astype(bf16), k_cache[...].astype(bf16),
            (((2,), (2,)), ((0,), (0,))),
            preferred_element_type=f32) * scale          # [Hkv, G*tq, T]

        rows = jax.lax.broadcasted_iota(jnp.int32, (GROUP * tq, t_total), 0)
        cols = jax.lax.broadcasted_iota(jnp.int32, (GROUP * tq, t_total), 1)
        qpos = i * tq + rows % tq                         # global query index
        bias = jnp.where(qpos >= cols, 0.0, -1e30).astype(f32)
        s = s + bias[None]                                # keep mask/softmax f32

        m = jnp.max(s, axis=-1, keepdims=True)
        p = jnp.exp(s - m)
        denom = jnp.sum(p, axis=-1, keepdims=True)
        p = p * pl.reciprocal(denom, approx=True)         # divide on EUP
        o = jax.lax.dot_general(
            p.astype(bf16), v_cache[...].astype(bf16),
            (((2,), (1,)), ((0,), (0,))),
            preferred_element_type=f32)                   # [Hkv, G*tq, D]

        # ---- o_proj fused with the head re-merge (no lane concat):
        #      accumulate per-head [tq, D] @ [D, hidden] partial products ----
        attn_o = None
        for kvh in range(NUM_KV_HEADS):
            for g in range(GROUP):
                hh = kvh * GROUP + g
                part = jnp.dot(
                    o[kvh, g * tq:(g + 1) * tq, :].astype(bf16),
                    o_w_ref[hh * HEAD_DIM:(hh + 1) * HEAD_DIM, :],
                    preferred_element_type=f32)
                attn_o = part if attn_o is None else attn_o + part

        # ---- post_attention_layernorm (+ fused residual add) ----
        x2 = attn_o + x
        res_out_ref[...] = x2.astype(res_out_ref.dtype)
        h2 = _rmsnorm(x2, w_post_ref[...].astype(f32))

        # ---- MLP: fused gate_up matmul (lane-dense [tq, 2*I]), gelu-tanh * up ----
        gate_up = jnp.dot(h2.astype(bf16), gu_w_ref[...],
                          preferred_element_type=f32)
        gate = gate_up[:, :INTERMEDIATE]
        up = gate_up[:, INTERMEDIATE:]
        c = math.sqrt(2.0 / math.pi)
        g_act = 0.5 * gate * (1.0 + jnp.tanh(
            c * (gate + 0.044715 * gate * gate * gate)))
        out = jnp.dot((g_act * up).astype(bf16), down_w_ref[...],
                      preferred_element_type=f32)
        out_ref[...] = out.astype(out_ref.dtype)

    return kernel


# ----------------------- wrapper -----------------------
def _build_rope_tables(positions):
    inv_freq = 1.0 / (ROPE_THETA ** (
        jnp.arange(0, HEAD_DIM, 2, dtype=jnp.float32) / HEAD_DIM))
    freqs = positions.astype(jnp.float32)[:, None] * inv_freq[None, :]  # [T, D/2]
    cos, sin = jnp.cos(freqs), jnp.sin(freqs)
    # full-width duplicated-half tables -> full-head-dim vregs in-kernel
    return (jnp.concatenate([cos, cos], axis=-1),
            jnp.concatenate([sin, sin], axis=-1))


def gemma_decoder_layer(positions, hidden_states, residual, params):
    """Pallas implementation of GemmaDecoderLayer.forward (one fused kernel)."""
    T = hidden_states.shape[0]
    assert T % TQ == 0, "token count must be a multiple of the query tile"
    nt = T // TQ
    has_residual = residual is not None

    cos_f, sin_f = _build_rope_tables(positions)
    kernel = _make_kernel(has_residual, T, TQ)

    tok_spec = pl.BlockSpec((TQ, HIDDEN), lambda i: (i, 0))
    rope_spec = pl.BlockSpec((TQ, HEAD_DIM), lambda i: (i, 0))

    def full_spec(arr):
        nd = arr.ndim
        return pl.BlockSpec(arr.shape, lambda i, _nd=nd: (0,) * _nd)

    weights = (params["input_ln"], params["post_ln"], params["qkv_w"],
               params["o_w"], params["gate_up_w"], params["down_w"])

    in_arrays = ((hidden_states,)
                 + ((residual,) if has_residual else ())
                 + weights + (cos_f, sin_f))
    in_specs = ([tok_spec] + ([tok_spec] if has_residual else [])
                + [full_spec(w) for w in weights]
                + [rope_spec, rope_spec])

    out, res_out = pl.pallas_call(
        kernel,
        grid=(nt,),
        in_specs=in_specs,
        out_specs=(tok_spec, tok_spec),
        out_shape=(jax.ShapeDtypeStruct((T, HIDDEN), hidden_states.dtype),
                   jax.ShapeDtypeStruct((T, HIDDEN), hidden_states.dtype)),
        scratch_shapes=[
            pltpu.VMEM((NUM_KV_HEADS, GROUP * TQ, HEAD_DIM), jnp.float32),  # q (tile)
            pltpu.VMEM((NUM_KV_HEADS, T, HEAD_DIM), jnp.float32),           # K cache
            pltpu.VMEM((NUM_KV_HEADS, T, HEAD_DIM), jnp.float32),           # V cache
        ],
        # residual flows in place (donated); {} on the first layer
        input_output_aliases={1: 1} if has_residual else {},
        compiler_params=pltpu.CompilerParams(
            # sequential: K/V scratch written at step i is read by steps >= i
            dimension_semantics=("arbitrary",),
            vmem_limit_bytes=32 * 1024 * 1024,
        ),
    )(*in_arrays)
    return out, res_out


# ----------------------- pure-JAX reference -----------------------
def _ref_forward(positions, hidden_states, residual, params):
    T = hidden_states.shape[0]
    f32, bf16 = jnp.float32, jnp.bfloat16

    def bdot(a, b):
        # mirror the kernel: bf16 MXU operands, f32 accumulation
        return jnp.dot(a.astype(bf16), b.astype(bf16), preferred_element_type=f32)

    def rmsnorm(x, w):
        var = jnp.mean(x * x, axis=-1, keepdims=True)
        return x * jax.lax.rsqrt(var + RMS_EPS) * (1.0 + w)

    x = hidden_states.astype(f32)
    if residual is not None:
        x = x + residual.astype(f32)
    h = rmsnorm(x, params["input_ln"])

    qkv = bdot(h, params["qkv_w"])
    q = qkv[:, :Q_SIZE].reshape(T, NUM_HEADS, HEAD_DIM)
    k = qkv[:, Q_SIZE:Q_SIZE + KV_SIZE].reshape(T, NUM_KV_HEADS, HEAD_DIM)
    v = qkv[:, Q_SIZE + KV_SIZE:].reshape(T, NUM_KV_HEADS, HEAD_DIM)

    inv_freq = 1.0 / (ROPE_THETA ** (
        jnp.arange(0, HEAD_DIM, 2, dtype=f32) / HEAD_DIM))
    freqs = positions.astype(f32)[:, None] * inv_freq[None, :]
    cos, sin = jnp.cos(freqs)[:, None, :], jnp.sin(freqs)[:, None, :]

    def rope(t):
        x1, x2 = t[..., :HALF], t[..., HALF:]
        return jnp.concatenate([x1 * cos - x2 * sin, x2 * cos + x1 * sin], -1)

    q, k = rope(q), rope(k)
    kf = jnp.repeat(k, GROUP, axis=1)
    vf = jnp.repeat(v, GROUP, axis=1)
    s = jnp.einsum("qhd,khd->hqk", q.astype(bf16), kf.astype(bf16),
                   preferred_element_type=f32) * (HEAD_DIM ** -0.5)
    mask = jnp.tril(jnp.ones((T, T), bool))
    s = jnp.where(mask[None], s, -1e30)
    p = jax.nn.softmax(s, axis=-1)
    attn = jnp.einsum("hqk,khd->qhd", p.astype(bf16), vf.astype(bf16),
                      preferred_element_type=f32).reshape(T, Q_SIZE)
    attn = bdot(attn, params["o_w"])

    x = attn + x
    residual_out = x
    h2 = rmsnorm(x, params["post_ln"])

    gate_up = bdot(h2, params["gate_up_w"])
    gate, up = gate_up[:, :INTERMEDIATE], gate_up[:, INTERMEDIATE:]
    c = math.sqrt(2.0 / math.pi)
    g = 0.5 * gate * (1.0 + jnp.tanh(c * (gate + 0.044715 * gate ** 3)))
    out = bdot(g * up, params["down_w"])
    return out, residual_out


# ----------------------- main -----------------------
if __name__ == "__main__":
    key = jax.random.PRNGKey(0)
    ks = jax.random.split(key, 8)
    bf16 = jnp.bfloat16

    params = {
        # layernorm weights stay f32 (VPU math); matmul weights stored bf16
        "input_ln": 0.1 * jax.random.normal(ks[0], (1, HIDDEN), jnp.float32),
        "post_ln": 0.1 * jax.random.normal(ks[1], (1, HIDDEN), jnp.float32),
        "qkv_w": (0.05 * jax.random.normal(
            ks[2], (HIDDEN, QKV_SIZE), jnp.float32)).astype(bf16),
        "o_w": (0.05 * jax.random.normal(
            ks[3], (Q_SIZE, HIDDEN), jnp.float32)).astype(bf16),
        "gate_up_w": (0.05 * jax.random.normal(
            ks[4], (HIDDEN, 2 * INTERMEDIATE), jnp.float32)).astype(bf16),
        "down_w": (0.05 * jax.random.normal(
            ks[6], (INTERMEDIATE, HIDDEN), jnp.float32)).astype(bf16),
    }

    positions = jnp.arange(SEQ, dtype=jnp.int32)
    hidden_states = jax.random.normal(ks[7], (SEQ, HIDDEN), jnp.float32)

    layer = jax.jit(gemma_decoder_layer)

    # layer 1: residual path starts here (residual=None variant)
    out1, res1 = layer(positions, hidden_states, None, params)
    jax.block_until_ready((out1, res1))
    ref_out1, ref_res1 = _ref_forward(positions, hidden_states, None, params)
    assert jnp.allclose(out1, ref_out1, atol=1e-2, rtol=1e-2), "layer1 output mismatch"
    assert jnp.allclose(res1, ref_res1, atol=1e-2, rtol=1e-2), "layer1 residual mismatch"

    # layer 2: exercises the fused residual-add variant
    out2, res2 = layer(positions, out1, res1, params)
    jax.block_until_ready((out2, res2))
    ref_out2, ref_res2 = _ref_forward(positions, ref_out1, ref_res1, params)
    assert jnp.allclose(out2, ref_out2, atol=1e-2, rtol=1e-2), "layer2 output mismatch"
    assert jnp.allclose(res2, ref_res2, atol=1e-2, rtol=1e-2), "layer2 residual mismatch"

    print("KERNEL_OK")
</pallas_src>

<mosaic_0001>
module attributes {stable_mosaic.version = 11 : i64} {
  func.func @kernel(%arg0: i32, %arg1: memref<8x32xf32, #tpu.memory_space<vmem>>, %arg2: memref<1x32xf32, #tpu.memory_space<vmem>>, %arg3: memref<1x32xf32, #tpu.memory_space<vmem>>, %arg4: memref<32x128xbf16, #tpu.memory_space<vmem>>, %arg5: memref<64x32xbf16, #tpu.memory_space<vmem>>, %arg6: memref<32x128xbf16, #tpu.memory_space<vmem>>, %arg7: memref<64x32xbf16, #tpu.memory_space<vmem>>, %arg8: memref<8x16xf32, #tpu.memory_space<vmem>>, %arg9: memref<8x16xf32, #tpu.memory_space<vmem>>, %arg10: memref<8x32xf32, #tpu.memory_space<vmem>>, %arg11: memref<8x32xf32, #tpu.memory_space<vmem>>, %arg12: memref<2x16x16xf32, #tpu.memory_space<vmem>>, %arg13: memref<2x16x16xf32, #tpu.memory_space<vmem>>, %arg14: memref<2x16x16xf32, #tpu.memory_space<vmem>>) attributes {dimension_semantics = [#tpu.dimension_semantics<arbitrary>], iteration_bounds = array<i64: 2>, scalar_prefetch = 0 : i64, scratch_operands = 3 : i64, tpu.core_type = #tpu.core_type<tc>, window_params = [{transform_indices = @transform_0, window_bounds = array<i64: 8, 32>}, {pipeline_mode = #tpu.pipeline_mode<synchronous>, transform_indices = @transform_1, window_bounds = array<i64: 1, 32>}, {pipeline_mode = #tpu.pipeline_mode<synchronous>, transform_indices = @transform_2, window_bounds = array<i64: 1, 32>}, {pipeline_mode = #tpu.pipeline_mode<synchronous>, transform_indices = @transform_3, window_bounds = array<i64: 32, 128>}, {pipeline_mode = #tpu.pipeline_mode<synchronous>, transform_indices = @transform_4, window_bounds = array<i64: 64, 32>}, {pipeline_mode = #tpu.pipeline_mode<synchronous>, transform_indices = @transform_5, window_bounds = array<i64: 32, 128>}, {pipeline_mode = #tpu.pipeline_mode<synchronous>, transform_indices = @transform_6, window_bounds = array<i64: 64, 32>}, {transform_indices = @transform_7, window_bounds = array<i64: 8, 16>}, {transform_indices = @transform_8, window_bounds = array<i64: 8, 16>}, {transform_indices = @transform_9, window_bounds = array<i64: 8, 32>}, {transform_indices = @transform_10, window_bounds = array<i64: 8, 32>}]} {
    %c0_i32 = arith.constant 0 : i32
    %0 = arith.cmpi eq, %arg0, %c0_i32 : i32
    %1 = arith.extui %0 : i1 to i32
    %c0_i32_0 = arith.constant 0 : i32
    %2 = arith.cmpi ne, %1, %c0_i32_0 : i32
    scf.if %2 {
      %cst_89 = arith.constant 0.000000e+00 : f32
      %222 = vector.broadcast %cst_89 : f32 to vector<2x16x16xf32>
      %c0_90 = arith.constant 0 : index
      %c0_91 = arith.constant 0 : index
      %c0_92 = arith.constant 0 : index
      %223 = vector.load %arg13[%c0_90, %c0_91, %c0_92] : memref<2x16x16xf32, #tpu.memory_space<vmem>>, vector<2x16x16xf32>
      tpu.vector_store %arg13[%c0_90, %c0_91, %c0_92], %222 {strides = array<i32>} : memref<2x16x16xf32, #tpu.memory_space<vmem>>, vector<2x16x16xf32>,
      %cst_93 = arith.constant 0.000000e+00 : f32
      %224 = vector.broadcast %cst_93 : f32 to vector<2x16x16xf32>
      %c0_94 = arith.constant 0 : index
      %c0_95 = arith.constant 0 : index
      %c0_96 = arith.constant 0 : index
      %225 = vector.load %arg14[%c0_94, %c0_95, %c0_96] : memref<2x16x16xf32, #tpu.memory_space<vmem>>, vector<2x16x16xf32>
      tpu.vector_store %arg14[%c0_94, %c0_95, %c0_96], %224 {strides = array<i32>} : memref<2x16x16xf32, #tpu.memory_space<vmem>>, vector<2x16x16xf32>,
    } else {
    }
    %c0 = arith.constant 0 : index
    %c0_1 = arith.constant 0 : index
    %3 = vector.load %arg1[%c0, %c0_1] : memref<8x32xf32, #tpu.memory_space<vmem>>, vector<8x32xf32>
    %c0_2 = arith.constant 0 : index
    %c0_3 = arith.constant 0 : index
    %4 = vector.load %arg2[%c0_2, %c0_3] : memref<1x32xf32, #tpu.memory_space<vmem>>, vector<1x32xf32>
    %5 = arith.mulf %3, %3 : vector<8x32xf32>
    %cst = arith.constant dense<0.000000e+00> : vector<8xf32>
    %6 = vector.multi_reduction <add>, %5, %cst [1] : vector<8x32xf32> to vector<8xf32>
    %7 = vector.shape_cast %6 : vector<8xf32> to vector<8x1xf32>
    %cst_4 = arith.constant 3.200000e+01 : f32
    %8 = vector.broadcast %cst_4 : f32 to vector<8x1xf32>
    %9 = arith.divf %7, %8 : vector<8x1xf32>
    %cst_5 = arith.constant 9.99999997E-7 : f32
    %10 = vector.broadcast %cst_5 : f32 to vector<8x1xf32>
    %11 = arith.addf %9, %10 : vector<8x1xf32>
    %12 = math.rsqrt %11 : vector<8x1xf32>
    %13 = vector.broadcast %12 : vector<8x1xf32> to vector<8x32xf32>
    %14 = arith.mulf %3, %13 : vector<8x32xf32>
    %cst_6 = arith.constant 1.000000e+00 : f32
    %15 = vector.broadcast %cst_6 : f32 to vector<1x32xf32>
    %16 = arith.addf %15, %4 : vector<1x32xf32>
    %17 = vector.broadcast %16 : vector<1x32xf32> to vector<8x32xf32>
    %18 = arith.mulf %14, %17 : vector<8x32xf32>
    %19 = arith.truncf %18 : vector<8x32xf32> to vector<8x32xbf16>
    %c0_7 = arith.constant 0 : index
    %c0_8 = arith.constant 0 : index
    %20 = vector.load %arg4[%c0_7, %c0_8] : memref<32x128xbf16, #tpu.memory_space<vmem>>, vector<32x128xbf16>
    %cst_9 = arith.constant dense<0.000000e+00> : vector<8x128xf32>
    %21 = tpu.matmul %19, %20, %cst_9 {dimension_numbers = #tpu.dot_dimension_numbers<[1], [0], [0], [1], [0, 0, 1, 1], [], []>} : vector<8x32xbf16>, vector<32x128xbf16>, vector<8x128xf32> -> vector<8x128xf32>
    %c0_10 = arith.constant 0 : index
    %c0_11 = arith.constant 0 : index
    %22 = vector.load %arg8[%c0_10, %c0_11] : memref<8x16xf32, #tpu.memory_space<vmem>>, vector<8x16xf32>
    %c0_12 = arith.constant 0 : index
    %c0_13 = arith.constant 0 : index
    %23 = vector.load %arg9[%c0_12, %c0_13] : memref<8x16xf32, #tpu.memory_space<vmem>>, vector<8x16xf32>
    %c8_i32 = arith.constant 8 : i32
    %24 = arith.muli %arg0, %c8_i32 : i32
    %25 = tpu.assume_multiple %24, 8 : i32
    %26 = vector.extract_strided_slice %21 {offsets = [0, 0], sizes = [8, 16], strides = [1, 1]} : vector<8x128xf32> to vector<8x16xf32>
    %27 = vector.extract_strided_slice %26 {offsets = [0, 0], sizes = [8, 8], strides = [1, 1]} : vector<8x16xf32> to vector<8x8xf32>
    %28 = vector.extract_strided_slice %26 {offsets = [0, 8], sizes = [8, 8], strides = [1, 1]} : vector<8x16xf32> to vector<8x8xf32>
    %cst_14 = arith.constant 0.000000e+00 : f32
    %29 = vector.broadcast %cst_14 : f32 to vector<8x8xf32>
    %30 = arith.subf %29, %28 : vector<8x8xf32>
    %31 = tpu.concatenate %30, %27 in 1 : vector<8x8xf32>, vector<8x8xf32> -> vector<8x16xf32>
    %32 = arith.mulf %26, %22 : vector<8x16xf32>
    %33 = arith.mulf %31, %23 : vector<8x16xf32>
    %34 = arith.addf %32, %33 : vector<8x16xf32>
    %c0_15 = arith.constant 0 : index
    %c0_16 = arith.constant 0 : index
    %c0_17 = arith.constant 0 : index
    %35 = vector.load %arg12[%c0_15, %c0_16, %c0_17] : memref<2x16x16xf32, #tpu.memory_space<vmem>>, vector<1x8x16xf32>
    %36 = vector.shape_cast %35 : vector<1x8x16xf32> to vector<8x16xf32>
    %37 = vector.shape_cast %34 : vector<8x16xf32> to vector<1x8x16xf32>
    tpu.vector_store %arg12[%c0_15, %c0_16, %c0_17], %37 {strides = array<i32>} : memref<2x16x16xf32, #tpu.memory_space<vmem>>, vector<1x8x16xf32>,
    %38 = vector.extract_strided_slice %21 {offsets = [0, 16], sizes = [8, 16], strides = [1, 1]} : vector<8x128xf32> to vector<8x16xf32>
    %39 = vector.extract_strided_slice %38 {offsets = [0, 0], sizes = [8, 8], strides = [1, 1]} : vector<8x16xf32> to vector<8x8xf32>
    %40 = vector.extract_strided_slice %38 {offsets = [0, 8], sizes = [8, 8], strides = [1, 1]} : vector<8x16xf32> to vector<8x8xf32>
    %cst_18 = arith.constant 0.000000e+00 : f32
    %41 = vector.broadcast %cst_18 : f32 to vector<8x8xf32>
    %42 = arith.subf %41, %40 : vector<8x8xf32>
    %43 = tpu.concatenate %42, %39 in 1 : vector<8x8xf32>, vector<8x8xf32> -> vector<8x16xf32>
    %44 = arith.mulf %38, %22 : vector<8x16xf32>
    %45 = arith.mulf %43, %23 : vector<8x16xf32>
    %46 = arith.addf %44, %45 : vector<8x16xf32>
    %c0_19 = arith.constant 0 : index
    %c8 = arith.constant 8 : index
    %c0_20 = arith.constant 0 : index
    %47 = vector.load %arg12[%c0_19, %c8, %c0_20] : memref<2x16x16xf32, #tpu.memory_space<vmem>>, vector<1x8x16xf32>
    %48 = vector.shape_cast %47 : vector<1x8x16xf32> to vector<8x16xf32>
    %49 = vector.shape_cast %46 : vector<8x16xf32> to vector<1x8x16xf32>
    tpu.vector_store %arg12[%c0_19, %c8, %c0_20], %49 {strides = array<i32>} : memref<2x16x16xf32, #tpu.memory_space<vmem>>, vector<1x8x16xf32>,
    %50 = vector.extract_strided_slice %21 {offsets = [0, 64], sizes = [8, 16], strides = [1, 1]} : vector<8x128xf32> to vector<8x16xf32>
    %51 = vector.extract_strided_slice %50 {offsets = [0, 0], sizes = [8, 8], strides = [1, 1]} : vector<8x16xf32> to vector<8x8xf32>
    %52 = vector.extract_strided_slice %50 {offsets = [0, 8], sizes = [8, 8], strides = [1, 1]} : vector<8x16xf32> to vector<8x8xf32>
    %cst_21 = arith.constant 0.000000e+00 : f32
    %53 = vector.broadcast %cst_21 : f32 to vector<8x8xf32>
    %54 = arith.subf %53, %52 : vector<8x8xf32>
    %55 = tpu.concatenate %54, %51 in 1 : vector<8x8xf32>, vector<8x8xf32> -> vector<8x16xf32>
    %56 = arith.mulf %50, %22 : vector<8x16xf32>
    %57 = arith.mulf %55, %23 : vector<8x16xf32>
    %58 = arith.addf %56, %57 : vector<8x16xf32>
    %c0_22 = arith.constant 0 : index
    %59 = arith.index_cast %25 : i32 to index
    %c0_23 = arith.constant 0 : index
    %60 = vector.load %arg13[%c0_22, %59, %c0_23] : memref<2x16x16xf32, #tpu.memory_space<vmem>>, vector<1x8x16xf32>
    %61 = vector.shape_cast %60 : vector<1x8x16xf32> to vector<8x16xf32>
    %62 = vector.shape_cast %58 : vector<8x16xf32> to vector<1x8x16xf32>
    tpu.vector_store %arg13[%c0_22, %59, %c0_23], %62 {strides = array<i32>} : memref<2x16x16xf32, #tpu.memory_space<vmem>>, vector<1x8x16xf32>,
    %63 = vector.extract_strided_slice %21 {offsets = [0, 96], sizes = [8, 16], strides = [1, 1]} : vector<8x128xf32> to vector<8x16xf32>
    %c0_24 = arith.constant 0 : index
    %64 = arith.index_cast %25 : i32 to index
    %c0_25 = arith.constant 0 : index
    %65 = vector.load %arg14[%c0_24, %64, %c0_25] : memref<2x16x16xf32, #tpu.memory_space<vmem>>, vector<1x8x16xf32>
    %66 = vector.shape_cast %65 : vector<1x8x16xf32> to vector<8x16xf32>
    %67 = vector.shape_cast %63 : vector<8x16xf32> to vector<1x8x16xf32>
    tpu.vector_store %arg14[%c0_24, %64, %c0_25], %67 {strides = array<i32>} : memref<2x16x16xf32, #tpu.memory_space<vmem>>, vector<1x8x16xf32>,
    %68 = vector.extract_strided_slice %21 {offsets = [0, 32], sizes = [8, 16], strides = [1, 1]} : vector<8x128xf32> to vector<8x16xf32>
    %69 = vector.extract_strided_slice %68 {offsets = [0, 0], sizes = [8, 8], strides = [1, 1]} : vector<8x16xf32> to vector<8x8xf32>
    %70 = vector.extract_strided_slice %68 {offsets = [0, 8], sizes = [8, 8], strides = [1, 1]} : vector<8x16xf32> to vector<8x8xf32>
    %cst_26 = arith.constant 0.000000e+00 : f32
    %71 = vector.broadcast %cst_26 : f32 to vector<8x8xf32>
    %72 = arith.subf %71, %70 : vector<8x8xf32>
    %73 = tpu.concatenate %72, %69 in 1 : vector<8x8xf32>, vector<8x8xf32> -> vector<8x16xf32>
    %74 = arith.mulf %68, %22 : vector<8x16xf32>
    %75 = arith.mulf %73, %23 : vector<8x16xf32>
    %76 = arith.addf %74, %75 : vector<8x16xf32>
    %c1 = arith.constant 1 : index
    %c0_27 = arith.constant 0 : index
    %c0_28 = arith.constant 0 : index
    %77 = vector.load %arg12[%c1, %c0_27, %c0_28] : memref<2x16x16xf32, #tpu.memory_space<vmem>>, vector<1x8x16xf32>
    %78 = vector.shape_cast %77 : vector<1x8x16xf32> to vector<8x16xf32>
    %79 = vector.shape_cast %76 : vector<8x16xf32> to vector<1x8x16xf32>
    tpu.vector_store %arg12[%c1, %c0_27, %c0_28], %79 {strides = array<i32>} : memref<2x16x16xf32, #tpu.memory_space<vmem>>, vector<1x8x16xf32>,
    %80 = vector.extract_strided_slice %21 {offsets = [0, 48], sizes = [8, 16], strides = [1, 1]} : vector<8x128xf32> to vector<8x16xf32>
    %81 = vector.extract_strided_slice %80 {offsets = [0, 0], sizes = [8, 8], strides = [1, 1]} : vector<8x16xf32> to vector<8x8xf32>
    %82 = vector.extract_strided_slice %80 {offsets = [0, 8], sizes = [8, 8], strides = [1, 1]} : vector<8x16xf32> to vector<8x8xf32>
    %cst_29 = arith.constant 0.000000e+00 : f32
    %83 = vector.broadcast %cst_29 : f32 to vector<8x8xf32>
    %84 = arith.subf %83, %82 : vector<8x8xf32>
    %85 = tpu.concatenate %84, %81 in 1 : vector<8x8xf32>, vector<8x8xf32> -> vector<8x16xf32>
    %86 = arith.mulf %80, %22 : vector<8x16xf32>
    %87 = arith.mulf %85, %23 : vector<8x16xf32>
    %88 = arith.addf %86, %87 : vector<8x16xf32>
    %c1_30 = arith.constant 1 : index
    %c8_31 = arith.constant 8 : index
    %c0_32 = arith.constant 0 : index
    %89 = vector.load %arg12[%c1_30, %c8_31, %c0_32] : memref<2x16x16xf32, #tpu.memory_space<vmem>>, vector<1x8x16xf32>
    %90 = vector.shape_cast %89 : vector<1x8x16xf32> to vector<8x16xf32>
    %91 = vector.shape_cast %88 : vector<8x16xf32> to vector<1x8x16xf32>
    tpu.vector_store %arg12[%c1_30, %c8_31, %c0_32], %91 {strides = array<i32>} : memref<2x16x16xf32, #tpu.memory_space<vmem>>, vector<1x8x16xf32>,
    %92 = vector.extract_strided_slice %21 {offsets = [0, 80], sizes = [8, 16], strides = [1, 1]} : vector<8x128xf32> to vector<8x16xf32>
    %93 = vector.extract_strided_slice %92 {offsets = [0, 0], sizes = [8, 8], strides = [1, 1]} : vector<8x16xf32> to vector<8x8xf32>
    %94 = vector.extract_strided_slice %92 {offsets = [0, 8], sizes = [8, 8], strides = [1, 1]} : vector<8x16xf32> to vector<8x8xf32>
    %cst_33 = arith.constant 0.000000e+00 : f32
    %95 = vector.broadcast %cst_33 : f32 to vector<8x8xf32>
    %96 = arith.subf %95, %94 : vector<8x8xf32>
    %97 = tpu.concatenate %96, %93 in 1 : vector<8x8xf32>, vector<8x8xf32> -> vector<8x16xf32>
    %98 = arith.mulf %92, %22 : vector<8x16xf32>
    %99 = arith.mulf %97, %23 : vector<8x16xf32>
    %100 = arith.addf %98, %99 : vector<8x16xf32>
    %c1_34 = arith.constant 1 : index
    %101 = arith.index_cast %25 : i32 to index
    %c0_35 = arith.constant 0 : index
    %102 = vector.load %arg13[%c1_34, %101, %c0_35] : memref<2x16x16xf32, #tpu.memory_space<vmem>>, vector<1x8x16xf32>
    %103 = vector.shape_cast %102 : vector<1x8x16xf32> to vector<8x16xf32>
    %104 = vector.shape_cast %100 : vector<8x16xf32> to vector<1x8x16xf32>
    tpu.vector_store %arg13[%c1_34, %101, %c0_35], %104 {strides = array<i32>} : memref<2x16x16xf32, #tpu.memory_space<vmem>>, vector<1x8x16xf32>,
    %105 = vector.extract_strided_slice %21 {offsets = [0, 112], sizes = [8, 16], strides = [1, 1]} : vector<8x128xf32> to vector<8x16xf32>
    %c1_36 = arith.constant 1 : index
    %106 = arith.index_cast %25 : i32 to index
    %c0_37 = arith.constant 0 : index
    %107 = vector.load %arg14[%c1_36, %106, %c0_37] : memref<2x16x16xf32, #tpu.memory_space<vmem>>, vector<1x8x16xf32>
    %108 = vector.shape_cast %107 : vector<1x8x16xf32> to vector<8x16xf32>
    %109 = vector.shape_cast %105 : vector<8x16xf32> to vector<1x8x16xf32>
    tpu.vector_store %arg14[%c1_36, %106, %c0_37], %109 {strides = array<i32>} : memref<2x16x16xf32, #tpu.memory_space<vmem>>, vector<1x8x16xf32>,
    %c0_38 = arith.constant 0 : index
    %c0_39 = arith.constant 0 : index
    %c0_40 = arith.constant 0 : index
    %110 = vector.load %arg12[%c0_38, %c0_39, %c0_40] : memref<2x16x16xf32, #tpu.memory_space<vmem>>, vector<2x16x16xf32>
    %111 = arith.truncf %110 : vector<2x16x16xf32> to vector<2x16x16xbf16>
    %c0_41 = arith.constant 0 : index
    %c0_42 = arith.constant 0 : index
    %c0_43 = arith.constant 0 : index
    %112 = vector.load %arg13[%c0_41, %c0_42, %c0_43] : memref<2x16x16xf32, #tpu.memory_space<vmem>>, vector<2x16x16xf32>
    %113 = arith.truncf %112 : vector<2x16x16xf32> to vector<2x16x16xbf16>
    %cst_44 = arith.constant dense<0.000000e+00> : vector<2x16x16xf32>
    %114 = tpu.matmul %111, %113, %cst_44 {dimension_numbers = #tpu.dot_dimension_numbers<[2], [2], [1], [1], [0, 0, 0, 1, 1, 1], [0], [0]>} : vector<2x16x16xbf16>, vector<2x16x16xbf16>, vector<2x16x16xf32> -> vector<2x16x16xf32>
    %cst_45 = arith.constant 2.500000e-01 : f32
    %115 = vector.broadcast %cst_45 : f32 to vector<2x16x16xf32>
    %116 = arith.mulf %114, %115 : vector<2x16x16xf32>
    %117 = tpu.iota {dimensions = array<i32: 0>} : vector<16x16xi32>
    %118 = tpu.iota {dimensions = array<i32: 1>} : vector<16x16xi32>
    %c8_i32_46 = arith.constant 8 : i32
    %119 = arith.muli %arg0, %c8_i32_46 : i32
    %c8_i32_47 = arith.constant 8 : i32
    %c0_i32_48 = arith.constant 0 : i32
    %120 = arith.cmpi eq, %c8_i32_47, %c0_i32_48 : i32
    %c1_i32 = arith.constant 1 : i32
    %121 = arith.select %120, %c1_i32, %c8_i32_47 : i32
    %122 = vector.broadcast %121 : i32 to vector<16x16xi32>
    %123 = arith.remsi %117, %122 : vector<16x16xi32>
    %c0_i32_49 = arith.constant 0 : i32
    %124 = vector.broadcast %c0_i32_49 : i32 to vector<16x16xi32>
    %125 = arith.cmpi ne, %123, %124 : vector<16x16xi32>
    %c0_i32_50 = arith.constant 0 : i32
    %126 = vector.broadcast %c0_i32_50 : i32 to vector<16x16xi32>
    %127 = arith.cmpi slt, %123, %126 : vector<16x16xi32>
    %c0_i32_51 = arith.constant 0 : i32
    %128 = arith.cmpi slt, %121, %c0_i32_51 : i32
    %129 = vector.broadcast %128 : i1 to vector<16x16xi1>
    %130 = vector.broadcast %129 : vector<16x16xi1> to vector<16x16xi1>
    %131 = arith.xori %127, %130 : vector<16x16xi1>
    %132 = arith.andi %131, %125 : vector<16x16xi1>
    %133 = vector.broadcast %121 : i32 to vector<16x16xi32>
    %134 = arith.addi %123, %133 : vector<16x16xi32>
    %135 = arith.select %132, %134, %123 : vector<16x16xi1>, vector<16x16xi32>
    %136 = vector.broadcast %119 : i32 to vector<16x16xi32>
    %137 = arith.addi %136, %135 : vector<16x16xi32>
    %138 = arith.cmpi sge, %137, %118 : vector<16x16xi32>
    %cst_52 = arith.constant 0.000000e+00 : f32
    %cst_53 = arith.constant -1.000000e+30 : f32
    %139 = vector.broadcast %cst_52 : f32 to vector<16x16xf32>
    %140 = vector.broadcast %cst_53 : f32 to vector<16x16xf32>
    %141 = arith.select %138, %139, %140 : vector<16x16xi1>, vector<16x16xf32>
    %142 = vector.shape_cast %141 : vector<16x16xf32> to vector<1x16x16xf32>
    %143 = vector.broadcast %142 : vector<1x16x16xf32> to vector<2x16x16xf32>
    %144 = arith.addf %116, %143 : vector<2x16x16xf32>
    %cst_54 = arith.constant dense<0xFF800000> : vector<2x16xf32>
    %145 = vector.multi_reduction <maximumf>, %144, %cst_54 [2] : vector<2x16x16xf32> to vector<2x16xf32>
    %146 = vector.shape_cast %145 : vector<2x16xf32> to vector<2x16x1xf32>
    %147 = vector.broadcast %146 : vector<2x16x1xf32> to vector<2x16x16xf32>
    %148 = arith.subf %144, %147 : vector<2x16x16xf32>
    %149 = math.exp %148 : vector<2x16x16xf32>
    %cst_55 = arith.constant dense<0.000000e+00> : vector<2x16xf32>
    %150 = vector.multi_reduction <add>, %149, %cst_55 [2] : vector<2x16x16xf32> to vector<2x16xf32>
    %151 = vector.shape_cast %150 : vector<2x16xf32> to vector<2x16x1xf32>
    %152 = tpu.reciprocal %151 {approx = true} : vector<2x16x1xf32> -> vector<2x16x1xf32>
    %153 = vector.broadcast %152 : vector<2x16x1xf32> to vector<2x16x16xf32>
    %154 = arith.mulf %149, %153 : vector<2x16x16xf32>
    %155 = arith.truncf %154 : vector<2x16x16xf32> to vector<2x16x16xbf16>
    %c0_56 = arith.constant 0 : index
    %c0_57 = arith.constant 0 : index
    %c0_58 = arith.constant 0 : index
    %156 = vector.load %arg14[%c0_56, %c0_57, %c0_58] : memref<2x16x16xf32, #tpu.memory_space<vmem>>, vector<2x16x16xf32>
    %157 = arith.truncf %156 : vector<2x16x16xf32> to vector<2x16x16xbf16>
    %cst_59 = arith.constant dense<0.000000e+00> : vector<2x16x16xf32>
    %158 = tpu.matmul %155, %157, %cst_59 {dimension_numbers = #tpu.dot_dimension_numbers<[2], [1], [1], [2], [0, 0, 0, 1, 1, 2], [0], [0]>} : vector<2x16x16xbf16>, vector<2x16x16xbf16>, vector<2x16x16xf32> -> vector<2x16x16xf32>
    %159 = vector.extract_strided_slice %158 {offsets = [0, 0, 0], sizes = [1, 8, 16], strides = [1, 1, 1]} : vector<2x16x16xf32> to vector<1x8x16xf32>
    %160 = vector.shape_cast %159 : vector<1x8x16xf32> to vector<8x16xf32>
    %161 = arith.truncf %160 : vector<8x16xf32> to vector<8x16xbf16>
    %c0_60 = arith.constant 0 : index
    %c0_61 = arith.constant 0 : index
    %162 = vector.load %arg5[%c0_60, %c0_61] : memref<64x32xbf16, #tpu.memory_space<vmem>>, vector<16x32xbf16>
    %cst_62 = arith.constant dense<0.000000e+00> : vector<8x32xf32>
    %163 = tpu.matmul %161, %162, %cst_62 {dimension_numbers = #tpu.dot_dimension_numbers<[1], [0], [0], [1], [0, 0, 1, 1], [], []>} : vector<8x16xbf16>, vector<16x32xbf16>, vector<8x32xf32> -> vector<8x32xf32>
    %164 = vector.extract_strided_slice %158 {offsets = [0, 8, 0], sizes = [1, 8, 16], strides = [1, 1, 1]} : vector<2x16x16xf32> to vector<1x8x16xf32>
    %165 = vector.shape_cast %164 : vector<1x8x16xf32> to vector<8x16xf32>
    %166 = arith.truncf %165 : vector<8x16xf32> to vector<8x16xbf16>
    %c16 = arith.constant 16 : index
    %c0_63 = arith.constant 0 : index
    %167 = vector.load %arg5[%c16, %c0_63] : memref<64x32xbf16, #tpu.memory_space<vmem>>, vector<16x32xbf16>
    %cst_64 = arith.constant dense<0.000000e+00> : vector<8x32xf32>
    %168 = tpu.matmul %166, %167, %cst_64 {dimension_numbers = #tpu.dot_dimension_numbers<[1], [0], [0], [1], [0, 0, 1, 1], [], []>} : vector<8x16xbf16>, vector<16x32xbf16>, vector<8x32xf32> -> vector<8x32xf32>
    %169 = arith.addf %163, %168 : vector<8x32xf32>
    %170 = vector.extract_strided_slice %158 {offsets = [1, 0, 0], sizes = [1, 8, 16], strides = [1, 1, 1]} : vector<2x16x16xf32> to vector<1x8x16xf32>
    %171 = vector.shape_cast %170 : vector<1x8x16xf32> to vector<8x16xf32>
    %172 = arith.truncf %171 : vector<8x16xf32> to vector<8x16xbf16>
    %c32 = arith.constant 32 : index
    %c0_65 = arith.constant 0 : index
    %173 = vector.load %arg5[%c32, %c0_65] : memref<64x32xbf16, #tpu.memory_space<vmem>>, vector<16x32xbf16>
    %cst_66 = arith.constant dense<0.000000e+00> : vector<8x32xf32>
    %174 = tpu.matmul %172, %173, %cst_66 {dimension_numbers = #tpu.dot_dimension_numbers<[1], [0], [0], [1], [0, 0, 1, 1], [], []>} : vector<8x16xbf16>, vector<16x32xbf16>, vector<8x32xf32> -> vector<8x32xf32>
    %175 = arith.addf %169, %174 : vector<8x32xf32>
    %176 = vector.extract_strided_slice %158 {offsets = [1, 8, 0], sizes = [1, 8, 16], strides = [1, 1, 1]} : vector<2x16x16xf32> to vector<1x8x16xf32>
    %177 = vector.shape_cast %176 : vector<1x8x16xf32> to vector<8x16xf32>
    %178 = arith.truncf %177 : vector<8x16xf32> to vector<8x16xbf16>
    %c48 = arith.constant 48 : index
    %c0_67 = arith.constant 0 : index
    %179 = vector.load %arg5[%c48, %c0_67] : memref<64x32xbf16, #tpu.memory_space<vmem>>, vector<16x32xbf16>
    %cst_68 = arith.constant dense<0.000000e+00> : vector<8x32xf32>
    %180 = tpu.matmul %178, %179, %cst_68 {dimension_numbers = #tpu.dot_dimension_numbers<[1], [0], [0], [1], [0, 0, 1, 1], [], []>} : vector<8x16xbf16>, vector<16x32xbf16>, vector<8x32xf32> -> vector<8x32xf32>
    %181 = arith.addf %175, %180 : vector<8x32xf32>
    %182 = arith.addf %181, %3 : vector<8x32xf32>
    %c0_69 = arith.constant 0 : index
    %c0_70 = arith.constant 0 : index
    %183 = vector.load %arg11[%c0_69, %c0_70] : memref<8x32xf32, #tpu.memory_space<vmem>>, vector<8x32xf32>
    tpu.vector_store %arg11[%c0_69, %c0_70], %182 {strides = array<i32>} : memref<8x32xf32, #tpu.memory_space<vmem>>, vector<8x32xf32>,
    %c0_71 = arith.constant 0 : index
    %c0_72 = arith.constant 0 : index
    %184 = vector.load %arg3[%c0_71, %c0_72] : memref<1x32xf32, #tpu.memory_space<vmem>>, vector<1x32xf32>
    %185 = arith.mulf %182, %182 : vector<8x32xf32>
    %cst_73 = arith.constant dense<0.000000e+00> : vector<8xf32>
    %186 = vector.multi_reduction <add>, %185, %cst_73 [1] : vector<8x32xf32> to vector<8xf32>
    %187 = vector.shape_cast %186 : vector<8xf32> to vector<8x1xf32>
    %cst_74 = arith.constant 3.200000e+01 : f32
    %188 = vector.broadcast %cst_74 : f32 to vector<8x1xf32>
    %189 = arith.divf %187, %188 : vector<8x1xf32>
    %cst_75 = arith.constant 9.99999997E-7 : f32
    %190 = vector.broadcast %cst_75 : f32 to vector<8x1xf32>
    %191 = arith.addf %189, %190 : vector<8x1xf32>
    %192 = math.rsqrt %191 : vector<8x1xf32>
    %193 = vector.broadcast %192 : vector<8x1xf32> to vector<8x32xf32>
    %194 = arith.mulf %182, %193 : vector<8x32xf32>
    %cst_76 = arith.constant 1.000000e+00 : f32
    %195 = vector.broadcast %cst_76 : f32 to vector<1x32xf32>
    %196 = arith.addf %195, %184 : vector<1x32xf32>
    %197 = vector.broadcast %196 : vector<1x32xf32> to vector<8x32xf32>
    %198 = arith.mulf %194, %197 : vector<8x32xf32>
    %199 = arith.truncf %198 : vector<8x32xf32> to vector<8x32xbf16>
    %c0_77 = arith.constant 0 : index
    %c0_78 = arith.constant 0 : index
    %200 = vector.load %arg6[%c0_77, %c0_78] : memref<32x128xbf16, #tpu.memory_space<vmem>>, vector<32x128xbf16>
    %cst_79 = arith.constant dense<0.000000e+00> : vector<8x128xf32>
    %201 = tpu.matmul %199, %200, %cst_79 {dimension_numbers = #tpu.dot_dimension_numbers<[1], [0], [0], [1], [0, 0, 1, 1], [], []>} : vector<8x32xbf16>, vector<32x128xbf16>, vector<8x128xf32> -> vector<8x128xf32>
    %202 = vector.extract_strided_slice %201 {offsets = [0, 0], sizes = [8, 64], strides = [1, 1]} : vector<8x128xf32> to vector<8x64xf32>
    %203 = vector.extract_strided_slice %201 {offsets = [0, 64], sizes = [8, 64], strides = [1, 1]} : vector<8x128xf32> to vector<8x64xf32>
    %cst_80 = arith.constant 5.000000e-01 : f32
    %204 = vector.broadcast %cst_80 : f32 to vector<8x64xf32>
    %205 = arith.mulf %204, %202 : vector<8x64xf32>
    %cst_81 = arith.constant 4.471500e-02 : f32
    %206 = vector.broadcast %cst_81 : f32 to vector<8x64xf32>
    %207 = arith.mulf %206, %202 : vector<8x64xf32>
    %208 = arith.mulf %207, %202 : vector<8x64xf32>
    %209 = arith.mulf %208, %202 : vector<8x64xf32>
    %210 = arith.addf %202, %209 : vector<8x64xf32>
    %cst_82 = arith.constant 0.797884583 : f32
    %211 = vector.broadcast %cst_82 : f32 to vector<8x64xf32>
    %212 = arith.mulf %211, %210 : vector<8x64xf32>
    %213 = math.tanh %212 : vector<8x64xf32>
    %cst_83 = arith.constant 1.000000e+00 : f32
    %214 = vector.broadcast %cst_83 : f32 to vector<8x64xf32>
    %215 = arith.addf %214, %213 : vector<8x64xf32>
    %216 = arith.mulf %205, %215 : vector<8x64xf32>
    %217 = arith.mulf %216, %203 : vector<8x64xf32>
    %218 = arith.truncf %217 : vector<8x64xf32> to vector<8x64xbf16>
    %c0_84 = arith.constant 0 : index
    %c0_85 = arith.constant 0 : index
    %219 = vector.load %arg7[%c0_84, %c0_85] : memref<64x32xbf16, #tpu.memory_space<vmem>>, vector<64x32xbf16>
    %cst_86 = arith.constant dense<0.000000e+00> : vector<8x32xf32>
    %220 = tpu.matmul %218, %219, %cst_86 {dimension_numbers = #tpu.dot_dimension_numbers<[1], [0], [0], [1], [0, 0, 1, 1], [], []>} : vector<8x64xbf16>, vector<64x32xbf16>, vector<8x32xf32> -> vector<8x32xf32>
    %c0_87 = arith.constant 0 : index
    %c0_88 = arith.constant 0 : index
    %221 = vector.load %arg10[%c0_87, %c0_88] : memref<8x32xf32, #tpu.memory_space<vmem>>, vector<8x32xf32>
    tpu.vector_store %arg10[%c0_87, %c0_88], %220 {strides = array<i32>} : memref<8x32xf32, #tpu.memory_space<vmem>>, vector<8x32xf32>,
    return
  }
  func.func @transform_0(%arg0: i32) -> (i32, i32) {
    %c0_i32 = arith.constant 0 : i32
    %c0_i32_0 = arith.constant 0 : i32
    return %arg0, %c0_i32 : i32, i32
  }
  func.func @transform_1(%arg0: i32) -> (i32, i32) {
    %c0_i32 = arith.constant 0 : i32
    %c0_i32_0 = arith.constant 0 : i32
    %c0_i32_1 = arith.constant 0 : i32
    return %c0_i32, %c0_i32_0 : i32, i32
  }
  func.func @transform_2(%arg0: i32) -> (i32, i32) {
    %c0_i32 = arith.constant 0 : i32
    %c0_i32_0 = arith.constant 0 : i32
    %c0_i32_1 = arith.constant 0 : i32
    return %c0_i32, %c0_i32_0 : i32, i32
  }
  func.func @transform_3(%arg0: i32) -> (i32, i32) {
    %c0_i32 = arith.constant 0 : i32
    %c0_i32_0 = arith.constant 0 : i32
    %c0_i32_1 = arith.constant 0 : i32
    return %c0_i32, %c0_i32_0 : i32, i32
  }
  func.func @transform_4(%arg0: i32) -> (i32, i32) {
    %c0_i32 = arith.constant 0 : i32
    %c0_i32_0 = arith.constant 0 : i32
    %c0_i32_1 = arith.constant 0 : i32
    return %c0_i32, %c0_i32_0 : i32, i32
  }
  func.func @transform_5(%arg0: i32) -> (i32, i32) {
    %c0_i32 = arith.constant 0 : i32
    %c0_i32_0 = arith.constant 0 : i32
    %c0_i32_1 = arith.constant 0 : i32
    return %c0_i32, %c0_i32_0 : i32, i32
  }
  func.func @transform_6(%arg0: i32) -> (i32, i32) {
    %c0_i32 = arith.constant 0 : i32
    %c0_i32_0 = arith.constant 0 : i32
    %c0_i32_1 = arith.constant 0 : i32
    return %c0_i32, %c0_i32_0 : i32, i32
  }
  func.func @transform_7(%arg0: i32) -> (i32, i32) {
    %c0_i32 = arith.constant 0 : i32
    %c0_i32_0 = arith.constant 0 : i32
    return %arg0, %c0_i32 : i32, i32
  }
  func.func @transform_8(%arg0: i32) -> (i32, i32) {
    %c0_i32 = arith.constant 0 : i32
    %c0_i32_0 = arith.constant 0 : i32
    return %arg0, %c0_i32 : i32, i32
  }
  func.func @transform_9(%arg0: i32) -> (i32, i32) {
    %c0_i32 = arith.constant 0 : i32
    %c0_i32_0 = arith.constant 0 : i32
    return %arg0, %c0_i32 : i32, i32
  }
  func.func @transform_10(%arg0: i32) -> (i32, i32) {
    %c0_i32 = arith.constant 0 : i32
    %c0_i32_0 = arith.constant 0 : i32
    return %arg0, %c0_i32 : i32, i32
  }
}

</mosaic_0001>

<bundles_post_ra>
// kernel: gemma_decoder_layer.1
= control target key start
LH: loop header
LB: loop body
LE: loop exit
PB: predicated region body
PF: predicated region fallthrough
CT: control target
= control target key end

     0   :  { %16 = vsyncpa [#allocation6], 0  ;;  %s2226_s0 = inlined_call_operand.vmem [shape: f32[16,32], index: 0, kind: input, shape index: {}]   ;;  %s2227_s1 = inlined_call_operand.vmem [shape: f32[1,32], index: 1, kind: input, shape index: {}]   ;;  %s2228_s2 = inlined_call_operand.vmem [shape: f32[1,32], index: 2, kind: input, shape index: {}]   ;;  %s2229_s3 = inlined_call_operand.vmem [shape: bf16[32,128], index: 3, kind: input, shape index: {}]   ;;  %s2230_s4 = inlined_call_operand.vmem [shape: bf16[64,32], index: 4, kind: input, shape index: {}]   ;;  %s2231_s5 = inlined_call_operand.vmem [shape: bf16[32,128], index: 5, kind: input, shape index: {}]   ;;  %s2232_s6 = inlined_call_operand.vmem [shape: bf16[64,32], index: 6, kind: input, shape index: {}]   ;;  %s2233_s7 = inlined_call_operand.vmem [shape: f32[16,16], index: 7, kind: input, shape index: {}]   ;;  %s2234_s8 = inlined_call_operand.vmem [shape: f32[16,16], index: 8, kind: input, shape index: {}]   ;;  %s2235_s9 = inlined_call_operand.hbm [shape: f32[16,32], index: 9, kind: output, shape index: {0}]   ;;  %s2236_s10 = inlined_call_operand.hbm [shape: f32[16,32], index: 10, kind: output, shape index: {1}]  }
   0x1   :  { %18 = vsyncpa [#allocation6 + $0x1], 0 }
   0x2   :  { %19 = vsyncpa [#allocation8], 0 }
   0x3   :  { %21 = vsyncpa [#allocation8 + $0x1], 0  ;;  %s1876_s13 = smov 0   ;;  %s1878_s14 = smov 0  }
   0x4   :  { %s1880_s15 = smov 0   ;;  %s1882_s16 = smov 0  }
   0x5 LB: > { %2242 = sst [smem:[#allocation11_spill]] %s1791_s14  ;;  %s1897_s17 = sadd.s32 4294967295, %s1799_s16   ;;  %s1799_s16 = sphi %s1882_s16, %s2249_s16   ;;  %s1795_s15 = sphi %s1880_s15, %s2252_s15   ;;  %s1791_s14 = sphi %s1878_s14, %s2251_s14   ;;  %s1787_s13 = sphi %s1876_s13, %s2250_s13  }
   0x6   : > { %2243 = sst [smem:[#allocation12_spill]] %s1795_s15  ;;  %s1466_s18 = sadd.s32 4294967294, %s1799_s16  }
   0x7   : > { %s1901_s19 = sadd.s32 1, %s1799_s16   ;;  %s238_s20 = sadd.s32 1, %s1795_s15 }
   0x8   : > { %2244 = sst [smem:[#allocation13_spill]] %s1901_s19  ;;  %s235_s21 = ssub.s32 %s1799_s16, %s1901_s19 }
   0x9   : > { %p248_p0 = scmp.ne.s32.totalorder %s1795_s15, %s1791_s14  ;;  %p236_p1 = scmp.eq.s32.totalorder %s235_s21, 0 }
   0xa   : > { %p249_p2 = scmp.eq.s32.totalorder %s1897_s17, 1  ;;  %p254_p3 = scmp.ne.s32.totalorder %s1791_s14, %s1787_s13 }
   0xb   : > { %p255_p4 = scmp.eq.s32.totalorder %s1466_s18, 1  ;;  %p1469_p7 = scmp.ge.s32.totalorder %s1799_s16, 1 }
   0xc   : > { %s1912_s22 = scalar_select %p236_p1, %s1795_s15, %s238_s20  }
   0xd   : > { %p1914_p5 = por %p249_p2, %p248_p0  ;;  %p1918_p6 = por %p255_p4, %p254_p3 }
   0xe   : > { %2245 = sst [smem:[#allocation14_spill]] %s1912_s22  ;;  %p338_p8 = scmp.lt.s32.totalorder %s1799_s16, 3 }
  0x10   : > { %p339_p9 = pnand %p1469_p7, %p338_p8 }
  0x11   : > { %s1925_s25 = sand.u32 (!%p339_p9), 1, %s1791_s14   ;;  %p388_p10 = scmp.lt.s32.totalorder (!%p339_p9), %s1897_s17, 1 }
  0x12   : > { %342 = sbr.rel (%p339_p9) target bundleno = 2387 (0x953), region = 56  ;;  %s1470_s26 = sshll.u32 (!%p339_p9), %s1925_s25, 3 }
  0x13   : > { %s1944_s14 = scalar_lea.vmem (!%p339_p9), [#allocation5], %s1470_s26  ;;  %s1946_s19 = scalar_lea.vmem (!%p339_p9), [#allocation7], %s1470_s26 }
  0x14   : > { %p1475_p11 = scmp.ne.s32.totalorder (!%p339_p9), %s1897_s17, 0 }
  0x17   : > { %s389_s27 = scalar_select %p388_p10, %s1897_s17, 1 }
  0x18   : > { %404 = sbr.rel (%p1475_p11) target bundleno = 34 (0x22), region = 60 }
  0x19   : > { %s1930_s28 = sshll.u32 %s389_s27, 3 }
  0x1a   : > { %s391_s11 = scalar_lea.vmem %s2226_s0, %s1930_s28  ;;  %s395_s20 = scalar_lea.vmem %s2233_s7, %s1930_s28 }
  0x1b   : > { %s399_s15 = scalar_lea.vmem %s2234_s8, %s1930_s28 }
  0x1d   : > { %vm405_vm0 = vcmask 130048   ;;  %v1801_v0 = vmov 0.0  }
  0x1e   : > { %406 = vst.msk [vmem:[#allocation3] sm:$0xff] %vm405_vm0, %v1801_v0  ;;  %407 = vst.msk [vmem:[#allocation3 + $0x8] sm:$0xff] %vm405_vm0, %v1801_v0 }
  0x1f   : > { %408 = vst.msk [vmem:[#allocation3 + $0x10] sm:$0xff] %vm405_vm0, %v1801_v0  ;;  %409 = vst.msk [vmem:[#allocation3 + $0x18] sm:$0xff] %vm405_vm0, %v1801_v0 }
  0x20   : > { %410 = vst.msk [vmem:[#allocation4] sm:$0xff] %vm405_vm0, %v1801_v0  ;;  %411 = vst.msk [vmem:[#allocation4 + $0x8] sm:$0xff] %vm405_vm0, %v1801_v0 }
  0x21   : > { %412 = vst.msk [vmem:[#allocation4 + $0x10] sm:$0xff] %vm405_vm0, %v1801_v0  ;;  %413 = vst.msk [vmem:[#allocation4 + $0x18] sm:$0xff] %vm405_vm0, %v1801_v0 }
  0x22 PF: > { %v1949_v1 = vld [vmem:[%s391_s11] sm:$0xff]  ;;  %vm417_vm1 = vcmask 261120   ;;  %v1675_v4 = vld [vmem:[%s2229_s3 + $0x8] sm:$0xff]   ;;  %v1802_v5 = vmov 0.0   ;;  %vm1803_vm2 = vmmov 0   ;;  %v428_v10 = vlaneseq  ;;  %s1804_s12 = smov 72  }
  0x23   : > { %v416_v2 = vmul.f32 %v1949_v1, %v1949_v1  ;;  %1537 = vmatprep.subr.bf16.mxu1 %v1802_v5  ;;  %1541 = vmatprep.mubr.msk.bf16.mxu1 %vm1803_vm2, %v1802_v5  ;;  %v1676_v6 = vld [vmem:[%s2229_s3] sm:$0xff]   ;;  %s1805_s18 = smov 56   ;;  %s1806_s21 = smov 40   ;;  %vm506_vm3 = vcmask 64512   ;;  %vm511_vm4 = vcmask 130048   ;;  %vm1264_vm7 = vcmask 523264  }
  0x24   : > { %1538 = vmatpush3.bf16.msra.mxu1 %v1675_v4  ;;  %1551 = vmatprep.subr.bf16.mxu0 %v1802_v5  ;;  %v1969_v11 = vshrl.u32 %v428_v10, 7  ;;  %v415_v12 = vld [vmem:[%s2227_s1] sm:$0x1]  ;;  %s1807_s27 = smov 64   ;;  %s1808_s29 = smov 120  }
  0x25   : > { %v418_v3 = vsel %vm417_vm1, %v416_v2, 0.0  ;;  %1539 = vmatprep.subr.bf16.mxu1 %v1802_v5  ;;  %1553 = vmatprep.mubr.msk.bf16.mxu0 %vm1803_vm2, %v1802_v5  ;;  %v426_v13 = vadd.f32 1.0, %v415_v12  ;;  %v1996_v25 = vld [vmem:[%s395_s20] sm:$0xff]  ;;  %s1809_s30 = smov 104   ;;  %s1810_s11 = smov 88  }
  0x26   : > { %419 = vadd.xlane.f32.xlu0 %v418_v3  ;;  %v430_v14 = vsub.s32 0, %v1969_v11  ;;  %s1811_s20 = smov 80   ;;  %v2013_v27 = vld [vmem:[%s399_s15] sm:$0xff]  ;;  %s1813_s15 = smov 32  }
  0x27   : > { %s1814_s28 = smov 48   ;;  %s1815_s22 = smov 8  }
  0x28   : > { %1540 = vmatpush3.bf16.msra.mxu1 %v1676_v6  ;;  %v431_v15 = vrot.slane %v426_v13, %v430_v14  ;;  %s1816_s26 = smov 112  }
  0x29   : > { %1545 = vmatprep.subr.bf16.mxu1 %v1802_v5 }
  0xaf   : > { %v420_v7 = vpop.xlane.xlu0 %419 }
  0xb0   : > { %v422_v8 = vmul.f32 0.03125, %v420_v7 }
  0xb2   : > { %v423_v9 = vadd.f32 1e-06, %v422_v8 }
  0xb4   : > { %1687 = vrsqrt.f32 %v423_v9 }
  0xc1   : > { %v1688_v16 = vpop.eup %1687 }
  0xc2   : > { %v425_v17 = vmul.f32 %v1688_v16, %v1949_v1 }
  0xc4   : > { %v433_v18 = vmul.f32 %v431_v15, %v425_v17 }
  0xc6   : > { %v434_v19 = vpack.c.bf16 %v433_v18, %v433_v18 }
  0xc8   : > { %1542 = vmatmul.mubr.msk.bf16.vlgmr.msra.gmra.mxu1 %vm417_vm1, %v434_v19 }
  0xc9   : > { %1547 = vmatprep.mubr.msk.bf16.mxu1 %vm1803_vm2, %v1802_v5 }
 0x188   : > { %v1981_v20 = vpop.f32.mrf.mxu1 }
 0x189   : > { %539 = vrot.lane.b32.xlu1 %v1981_v20, %s1804_s12  ;;  %v1985_v21 = vsub.f32 0.0, %v1981_v20  ;;  %v508_v12 = vmul.f32 %v1996_v25, %v1981_v20 }
 0x18a   : > { %v1543_v22 = vpop.f32.mrf.mxu1 }
 0x18b   : > { %536 = vrot.lane.b32.xlu0 %v1985_v21, %s1805_s18 }
 0x18c   : > { %v491_v23 = vpop.f32.mrf.mxu1 }
 0x18d   : > { %612 = vrot.lane.b32.xlu1 %v1981_v20, %s1805_s18 }
 0x18e   : > { %v1544_v24 = vpop.f32.mrf.mxu1 }
 0x18f   : > { %587 = vrot.lane.b32.xlu0 %v1985_v21, %s1804_s12 }
 0x191   : > { %609 = vrot.lane.b32.xlu1 %v1985_v21, %s1806_s21  ;;  %s1812_s21 = smov 16  }
 0x193   : > { %543 = vrot.lane.b32.xlu0 %v1996_v25, %s1807_s27 }
 0x195   : > { %516 = vrot.lane.b32.xlu1 %v1981_v20, %s1808_s29 }
 0x199   : > { %513 = vrot.lane.b32.xlu1 %v1985_v21, %s1809_s30 }
 0x19d   : > { %567 = vrot.lane.b32.xlu1 %v1981_v20, %s1809_s30  ;;  %s2045_s30 = sshll.u32 %s1897_s17, 3 }
 0x1a1   : > { %564 = vrot.lane.b32.xlu1 %v1985_v21, %s1810_s11 }
 0x1a5   : > { %590 = vrot.lane.b32.xlu1 %v1981_v20, %s1810_s11  ;;  %s557_s11 = scalar_lea.vmem [#allocation3], %s2045_s30 }
 0x1a9   : > { %616 = vrot.lane.b32.xlu1 %v1996_v25, %s1811_s20 }
 0x1fb   : > { %v540_v26 = vpop.permute.xlu1 %539 }
 0x1fd   : > { %v537_v28 = vpop.permute.xlu0 %536 }
 0x1fe   : > { %v542_v29 = vsel %vm506_vm3, %v537_v28, %v540_v26 }
 0x1ff   : > { %v547_v30 = vmul.f32 %v542_v29, %v2013_v27  ;;  %v613_v31 = vpop.permute.xlu1 %612 }
 0x201   : > { %549 = vrot.lane.b32.xlu0 %v547_v30, %s1807_s27  ;;  %v588_v43 = vpop.permute.xlu0 %587 }
 0x203   : > { %v610_v32 = vpop.permute.xlu1 %609 }
 0x204   : > { %v615_v33 = vsel %vm506_vm3, %v610_v32, %v613_v31 }
 0x205   : > { %v620_v34 = vmul.f32 %v615_v33, %v2013_v27  ;;  %521 = vrot.lane.b32.xlu0 %v1996_v25, %s1812_s21  ;;  %v544_v47 = vpop.permute.xlu0 %543 }
 0x206   : > { %v546_v48 = vmul.f32 %v544_v47, %v1981_v20 }
 0x207   : > { %622 = vrot.lane.b32.xlu1 %v620_v34, %s1811_s20  ;;  %v517_v35 = vpop.permute.xlu1 %516  ;;  %v757_v34 = vand.u32 7, %v1969_v11 }
 0x209   : > { %571 = vrot.lane.b32.xlu0 %v1996_v25, %s1813_s15 }
 0x20b   : > { %v514_v36 = vpop.permute.xlu1 %513 }
 0x20c   : > { %v519_v37 = vsel %vm506_vm3, %v514_v36, %v517_v35  ;;  %v750_v35 = vadd.s32 8, %v1969_v11  ;;  %v777_v36 = vstv %s2045_s30  ;;  %v1685_v11 = vld [vmem:[%s2232_s6 + $0x8] sm:$0xff]  }
 0x20d   : > { %v525_v38 = vmul.f32 %v519_v37, %v2013_v27  ;;  %v752_v37 = vand.u32 127, %v428_v10 }
 0x20f   : > { %527 = vrot.lane.b32.xlu1 %v525_v38, %s1812_s21  ;;  %v568_v39 = vpop.permute.xlu1 %567  ;;  %v778_v38 = vadd.s32 %v777_v36, %v757_v34 }
 0x211   : > { %vm780_vm5 = vcmp.ge.s32.totalorder %v778_v38, %v752_v37 }
 0x213   : > { %594 = vrot.lane.b32.xlu1 %v1996_v25, %s1814_s28  ;;  %v565_v40 = vpop.permute.xlu1 %564 }
 0x214   : > { %v570_v41 = vsel %vm506_vm3, %v565_v40, %v568_v39  ;;  %v764_v39 = vand.u32 7, %v750_v35 }
 0x215   : > { %v575_v42 = vmul.f32 %v570_v41, %v2013_v27 }
 0x216   : > { %v779_v40 = vadd.s32 %v777_v36, %v764_v39 }
 0x217   : > { %v591_v44 = vpop.permute.xlu1 %590  ;;  %577 = vrot.lane.b32.xlu0 %v575_v42, %s1813_s15  ;;  %v1818_v42 = vmov -1e+30  }
 0x218   : > { %v593_v45 = vsel %vm506_vm3, %v588_v43, %v591_v44  ;;  %v782_v43 = vsel %vm780_vm5, 0.0, %v1818_v42  ;;  %vm781_vm6 = vcmp.ge.s32.totalorder %v779_v40, %v752_v37 }
 0x219   : > { %v598_v46 = vmul.f32 %v593_v45, %v2013_v27 }
 0x21b   : > { %600 = vrot.lane.b32.xlu1 %v598_v46, %s1814_s28  ;;  %v617_v51 = vpop.permute.xlu1 %616 }
 0x21c   : > { %v619_v52 = vmul.f32 %v617_v51, %v1981_v20 }
 0x273   : > { %v550_v49 = vpop.permute.xlu0 %549 }
 0x274   : > { %v552_v50 = vadd.f32 %v550_v49, %v546_v48  ;;  %v783_v48 = vsel %vm781_vm6, 0.0, %v1818_v42 }
 0x276   : > { %554 = vrot.lane.b32.xlu0 %v552_v50, %s1807_s27 }
 0x277   : > { %v522_v55 = vpop.permute.xlu0 %521 }
 0x278   : > { %v524_v56 = vmul.f32 %v522_v55, %v1981_v20 }
 0x279   : > { %v623_v53 = vpop.permute.xlu1 %622 }
 0x27a   : > { %v625_v54 = vadd.f32 %v623_v53, %v619_v52  ;;  %499 = vrot.lane.b32.xlu0 %v1985_v21, %s1808_s29  ;;  %s1817_s29 = smov 96  }
 0x27b   : > { %v572_v59 = vpop.permute.xlu0 %571 }
 0x27c   : > { %627 = vrot.lane.b32.xlu1 %v625_v54, %s1814_s28  ;;  %v574_v60 = vmul.f32 %v572_v59, %v1981_v20  ;;  %s1315_s28 = scalar_lea.sflag [#allocation8], %s1925_s25 }
 0x280   : > { %503 = vrot.lane.b32.xlu1 %v1981_v20, %s1815_s22 }
 0x281   : > { %v528_v57 = vpop.permute.xlu1 %527 }
 0x282   : > { %v530_v58 = vadd.f32 %v528_v57, %v524_v56 }
 0x284   : > { %532 = vrot.lane.b32.xlu0 %v530_v58, %s1816_s26  ;;  %s1819_s26 = smov [#allocation7]  }
 0x285   : > { %v595_v61 = vpop.permute.xlu1 %594 }
 0x286   : > { %v597_v0 = vmul.f32 %v595_v61, %v1981_v20 }
 0x289   : > { %v578_v62 = vpop.permute.xlu0 %577 }
 0x28a   : > { %v580_v63 = vadd.f32 %v578_v62, %v574_v60 }
 0x28c   : > { %582 = vrot.lane.b32.xlu1 %v580_v63, %s1817_s29  ;;  %s1713_s29 = sshll.u32 %s1819_s26, 4  ;;  %s1714_s29 = int_to_ptr.vmem [resolvable:$false] %s1713_s29 }
 0x28d   : > { %v601_v2 = vpop.permute.xlu1 %600 }
 0x28e   : > { %v603_v3 = vadd.f32 %v601_v2, %v597_v0 }
 0x290   : > { %605 = vrot.lane.b32.xlu0 %v603_v3, %s1811_s20  ;;  %s562_s20 = scalar_lea.vmem [#allocation4], %s2045_s30  ;;  %s1715_s30 = scalar_lea.vmem %s1714_s29, 256 }
 0x2e8   : > { %v555_v4 = vpop.permute.xlu0 %554 }
 0x2e9   : > { %558 = vst.msk [vmem:[%s557_s11] sm:$0xff] %vm511_vm4, %v555_v4 }
 0x2ec   : > { %v500_v7 = vpop.permute.xlu0 %499 }
 0x2ee   : > { %v628_v6 = vpop.permute.xlu1 %627 }
 0x2ef   : > { %1481 = vst.msk [vmem:[%s557_s11 + $0x10] sm:$0xff] %vm511_vm4, %v628_v6 }
 0x2f2   : > { %v504_v8 = vpop.permute.xlu1 %503 }
 0x2f3   : > { %v507_v9 = vsel %vm506_vm3, %v500_v7, %v504_v8 }
 0x2f4   : > { %v509_v13 = vmul.f32 %v507_v9, %v2013_v27 }
 0x2f6   : > { %v510_v15 = vadd.f32 %v509_v13, %v508_v12  ;;  %v533_v16 = vpop.permute.xlu0 %532  ;;  %v644_v17 = vld [vmem:[#allocation3] sm:$0xff]  ;;  %v645_v18 = vld [vmem:[#allocation3 + $0x8] sm:$0xff]  ;;  %v646_v19 = vld [vmem:[#allocation3 + $0x10] sm:$0xff] }
 0x2f7   : > { %535 = vst.msk [vmem:[#allocation2 + $0x8] sm:$0xff] %vm511_vm4, %v533_v16  ;;  %v648_v21 = vpack.c.bf16 %v645_v18, %v644_v17  ;;  %v647_v22 = vld [vmem:[#allocation3 + $0x18] sm:$0xff] }
 0x2f8   : > { %512 = vst.msk [vmem:[#allocation2] sm:$0xff] %vm511_vm4, %v510_v15  ;;  %v649_v23 = vpack.c.bf16 %v647_v22, %v646_v19 }
 0x2f9   : > { %v654_v24 = vsel %vm511_vm4, %v648_v21, 0 }
 0x2fa   : > { %1546 = vmatpush3.bf16.xpose.msra.mxu1 %v654_v24  ;;  %v701_v26 = vsel %vm511_vm4, %v649_v23, 0 }
 0x2fb   : > { %1552 = vmatpush3.bf16.xpose.msra.mxu0 %v701_v26  ;;  %1557 = vmatprep.subr.bf16.mxu1 %v1802_v5 }
 0x2fc   : > { %1563 = vmatprep.subr.bf16.mxu0 %v1802_v5 }
 0x2fe   : > { %v583_v25 = vpop.permute.xlu1 %582  ;;  %v639_v27 = vld [vmem:[#allocation2 + $0x8] sm:$0xff] }
 0x2ff   : > { %586 = vst.msk [vmem:[#allocation2 + $0x10] sm:$0xff] %vm511_vm4, %v583_v25  ;;  %v638_v28 = vld [vmem:[#allocation2] sm:$0xff] }
 0x300   : > { %v642_v29 = vpack.c.bf16 %v639_v27, %v638_v28 }
 0x302   : > { %1548 = vmatmul.mubr.msk.bf16.vlgmr.msra.gmra.mxu1 %vm511_vm4, %v642_v29  ;;  %v606_v30 = vpop.permute.xlu0 %605 }
 0x303   : > { %608 = vst.msk [vmem:[#allocation2 + $0x18] sm:$0xff] %vm511_vm4, %v606_v30  ;;  %1559 = vmatprep.mubr.msk.bf16.mxu1 %vm1803_vm2, %v1802_v5 }
 0x306   : > { %v640_v31 = vld [vmem:[#allocation2 + $0x10] sm:$0xff] }
 0x30a   : > { %v641_v32 = vld [vmem:[#allocation2 + $0x18] sm:$0xff] }
 0x30b   : > { %v643_v33 = vpack.c.bf16 %v641_v32, %v640_v31 }
 0x30d   : > { %1554 = vmatmul.mubr.msk.bf16.vlgmr.msra.gmra.mxu0 %vm511_vm4, %v643_v33 }
 0x30e   : > { %1565 = vmatprep.mubr.msk.bf16.mxu0 %vm1803_vm2, %v1802_v5 }
 0x3c2   : > { %v690_v41 = vpop.f32.mrf.mxu1 }
 0x3c3   : > { %v744_v44 = vmul.f32 0.25, %v690_v41 }
 0x3c4   : > { %v1549_v45 = vpop.f32.mrf.mxu1 }
 0x3c5   : > { %v784_v46 = vadd.f32 %v782_v43, %v744_v44 }
 0x3c6   : > { %v693_v47 = vpop.f32.mrf.mxu1 }
 0x3c7   : > { %v745_v49 = vmul.f32 0.25, %v693_v47  ;;  %v788_v50 = vsel %vm511_vm4, %v784_v46, -inf  ;;  %v1678_v47 = vld [vmem:[%s2230_s4 + $0x8] sm:$0xff]  }
 0x3c8   : > { %789 = vmax.xlane.f32.xlu1 %v788_v50  ;;  %v1550_v51 = vpop.f32.mrf.mxu1 }
 0x3c9   : > { %v785_v52 = vadd.f32 %v783_v48, %v745_v49  ;;  %v1679_v49 = vld [vmem:[%s2230_s4 + $0x18] sm:$0xff]  }
 0x3cb   : > { %v791_v10 = vsel %vm511_vm4, %v785_v52, -inf }
 0x3cc   : > { %792 = vmax.xlane.f32.xlu0 %v791_v10 }
 0x3cd   : > { %v737_v53 = vpop.f32.mrf.mxu0 }
 0x3ce   : > { %v746_v54 = vmul.f32 0.25, %v737_v53 }
 0x3cf   : > { %v1555_v55 = vpop.f32.mrf.mxu0 }
 0x3d0   : > { %v786_v56 = vadd.f32 %v782_v43, %v746_v54  ;;  %v1680_v54 = vld [vmem:[%s2230_s4 + $0x10] sm:$0xff]  }
 0x3d1   : > { %v740_v57 = vpop.f32.mrf.mxu0 }
 0x3d2   : > { %v747_v58 = vmul.f32 0.25, %v740_v57  ;;  %v794_v59 = vsel %vm511_vm4, %v786_v56, -inf }
 0x3d3   : > { %v1556_v60 = vpop.f32.mrf.mxu0  ;;  %795 = vmax.xlane.f32.xlu0 %v794_v59 }
 0x3d4   : > { %v787_v61 = vadd.f32 %v783_v48, %v747_v58 }
 0x3d6   : > { %v797_v62 = vsel %vm511_vm4, %v787_v61, -inf }
 0x3d7   : > { %798 = vmax.xlane.f32.xlu1 %v797_v62 }
 0x451   : > { %v790_v63 = vpop.xlane.xlu1 %789 }
 0x452   : > { %v800_v0 = vsub.f32 %v784_v46, %v790_v63  ;;  %v1677_v46 = vld [vmem:[%s2230_s4] sm:$0xff]  }
 0x454   : > { %v804_v2 = vmul.f32 1.442695, %v800_v0 }
 0x455   : > { %v793_v3 = vpop.xlane.xlu0 %792 }
 0x456   : > { %1689 = vpow2.f32 %v804_v2  ;;  %v801_v4 = vsub.f32 %v785_v52, %v793_v3 }
 0x458   : > { %v806_v6 = vmul.f32 1.442695, %v801_v4 }
 0x45a   : > { %1691 = vpow2.f32 %v806_v6 }
 0x45c   : > { %v796_v7 = vpop.xlane.xlu0 %795 }
 0x45d   : > { %v802_v8 = vsub.f32 %v786_v56, %v796_v7 }
 0x45f   : > { %v808_v9 = vmul.f32 1.442695, %v802_v8 }
 0x460   : > { %v799_v12 = vpop.xlane.xlu1 %798 }
 0x461   : > { %1693 = vpow2.f32 %v808_v9  ;;  %v803_v13 = vsub.f32 %v787_v61, %v799_v12 }
 0x463   : > { %v1690_v15 = vpop.eup %1689  ;;  %v810_v16 = vmul.f32 1.442695, %v803_v13 }
 0x464   : > { %v812_v17 = vsel %vm511_vm4, %v1690_v15, 0.0 }
 0x465   : > { %1695 = vpow2.f32 %v810_v16  ;;  %813 = vadd.xlane.f32.xlu0 %v812_v17 }
 0x467   : > { %v1692_v18 = vpop.eup %1691 }
 0x468   : > { %v815_v19 = vsel %vm511_vm4, %v1692_v18, 0.0 }
 0x469   : > { %816 = vadd.xlane.f32.xlu1 %v815_v19 }
 0x46e   : > { %v1694_v21 = vpop.eup %1693 }
 0x46f   : > { %v818_v22 = vsel %vm511_vm4, %v1694_v21, 0.0 }
 0x470   : > { %819 = vadd.xlane.f32.xlu0 %v818_v22 }
 0x472   : > { %v1696_v23 = vpop.eup %1695 }
 0x473   : > { %v821_v24 = vsel %vm511_vm4, %v1696_v23, 0.0 }
 0x474   : > { %822 = vadd.xlane.f32.xlu1 %v821_v24 }
 0x485   : > { %633 = vrot.lane.b32.xlu1 %v1981_v20, %s1812_s21 }
 0x486   : > { %559 = vrot.lane.b32.xlu0 %v1981_v20, %s1813_s15  ;;  %s1341_s15 = sshll.u32 %s1946_s19, 4  ;;  %s1342_s15 = int_to_ptr.vmem [resolvable:$true] %s1341_s15 }
 0x487   : > { %s1709_s22 = scalar_lea.vmem %s1342_s15, 128  ;;  %p1716_p1 = scmp.lt.s32.totalorder %s1342_s15, %s1714_s29 }
 0x488   : > { %p1710_p12 = scmp.ne.s32.totalorder %s1342_s15, %s1709_s22  ;;  %p1717_p2 = scmp.lt.s32.totalorder %s1715_s30, %s1709_s22 }
 0x48a   : > { %p1711_p13 = pnand %p1710_p12, %p1914_p5  ;;  %p1718_p3 = por %p1717_p2, %p1716_p1 }
 0x48c   : > { %p1712_p0 = pneg %p1711_p13 }
 0x48e   : > { %p1719_p4 = pnand %p1718_p3, %p1712_p0 }
 0x4ee   : > { %v814_v26 = vpop.xlane.xlu0 %813 }
 0x4f2   : > { %v817_v25 = vpop.xlane.xlu1 %816 }
 0x4f3   : > { %1697 = vrcp.f32 %v817_v25  ;;  %v1682_v25 = vld [vmem:[%s2231_s5] sm:$0xff]  }
 0x4f4   : > { %1699 = vrcp.f32 %v814_v26  ;;  %v1681_v26 = vld [vmem:[%s2231_s5 + $0x8] sm:$0xff]  }
 0x4f9   : > { %v820_v27 = vpop.xlane.xlu0 %819 }
 0x4fa   : > { %1701 = vrcp.f32 %v820_v27 }
 0x4fd   : > { %v823_v28 = vpop.xlane.xlu1 %822  ;;  %v560_v29 = vpop.permute.xlu0 %559 }
 0x4fe   : > { %1703 = vrcp.f32 %v823_v28  ;;  %563 = vst.msk [vmem:[%s562_s20] sm:$0xff] %vm511_vm4, %v560_v29  ;;  %v1140_v29 = vld [vmem:[%s2228_s2] sm:$0x1] }
 0x500   : > { %v1698_v31 = vpop.eup %1697 }
 0x501   : > { %v634_v30 = vpop.permute.xlu1 %633  ;;  %v1700_v32 = vpop.eup %1699  ;;  %v829_v36 = vmul.f32 %v1698_v31, %v1692_v18 }
 0x502   : > { %1483 = vst.msk [vmem:[%s562_s20 + $0x10] sm:$0xff] %vm511_vm4, %v634_v30  ;;  %v828_v41 = vmul.f32 %v1700_v32, %v1690_v15  ;;  %v1149_v30 = vadd.f32 1.0, %v1140_v29 }
 0x504   : > { %v832_v44 = vpack.c.bf16 %v829_v36, %v828_v41  ;;  %v1154_v31 = vrot.slane %v1149_v30, %v430_v14  ;;  %v1684_v36 = vld [vmem:[%s2232_s6 + $0x10] sm:$0xff]   ;;  %v1686_v14 = vld [vmem:[%s2232_s6] sm:$0xff]  }
 0x507   : > { %v1702_v33 = vpop.eup %1701 }
 0x508   : > { %v830_v42 = vmul.f32 %v1702_v33, %v1694_v21 }
 0x509   : > { %v834_v34 = vld [vmem:[#allocation4] sm:$0xff]  ;;  %v835_v20 = vld [vmem:[#allocation4 + $0x8] sm:$0xff]  ;;  %v836_v35 = vld [vmem:[#allocation4 + $0x10] sm:$0xff] }
 0x50a   : > { %v838_v37 = vpack.c.bf16 %v835_v20, %v834_v34  ;;  %v837_v38 = vld [vmem:[#allocation4 + $0x18] sm:$0xff] }
 0x50b   : > { %v1704_v39 = vpop.eup %1703  ;;  %v839_v40 = vpack.c.bf16 %v837_v38, %v836_v35  ;;  %v1683_v35 = vld [vmem:[%s2232_s6 + $0x18] sm:$0xff]  }
 0x50c   : > { %1558 = vmatpush3.bf16.msra.mxu1 %v838_v37  ;;  %v831_v43 = vmul.f32 %v1704_v39, %v1696_v23 }
 0x50d   : > { %1564 = vmatpush3.bf16.msra.mxu0 %v839_v40  ;;  %1569 = vmatprep.subr.bf16.mxu1 %v1802_v5 }
 0x50e   : > { %v833_v45 = vpack.c.bf16 %v831_v43, %v830_v42  ;;  %1575 = vmatprep.subr.bf16.mxu0 %v1802_v5 }
 0x50f   : > { %1560 = vmatmul.mubr.msk.bf16.vlgmr.msra.gmra.mxu1 %vm511_vm4, %v832_v44 }
 0x510   : > { %1566 = vmatmul.mubr.msk.bf16.vlgmr.msra.gmra.mxu0 %vm511_vm4, %v833_v45  ;;  %1571 = vmatprep.mubr.msk.bf16.mxu1 %vm1803_vm2, %v1802_v5 }
 0x511   : > { %1577 = vmatprep.mubr.msk.bf16.mxu0 %vm1803_vm2, %v1802_v5  ;;  %1576 = vmatpush3.bf16.msra.mxu0 %v1677_v46 }
 0x512   : > { %1587 = vmatprep.subr.bf16.mxu0 %v1802_v5  ;;  %1570 = vmatpush3.bf16.msra.mxu1 %v1678_v47 }
 0x513   : > { %1581 = vmatprep.subr.bf16.mxu1 %v1802_v5 }
 0x5cf   : > { %v877_v48 = vpop.f32.mrf.mxu1 }
 0x5d0   : > { %v928_v50 = vpack.c.bf16 %v877_v48, %v877_v48  ;;  %v921_v51 = vpop.f32.mrf.mxu0 }
 0x5d1   : > { %v1561_v52 = vpop.f32.mrf.mxu1  ;;  %v1032_v60 = vpack.c.bf16 %v921_v51, %v921_v51 }
 0x5d2   : > { %v1567_v10 = vpop.f32.mrf.mxu0  ;;  %1578 = vmatmul.mubr.msk.bf16.vlgmr.msra.gmra.mxu0 %vm511_vm4, %v928_v50 }
 0x5d3   : > { %v880_v53 = vpop.f32.mrf.mxu1  ;;  %1588 = vmatpush3.bf16.msra.mxu0 %v1679_v49  ;;  %1589 = vmatprep.mubr.msk.bf16.mxu0 %vm1803_vm2, %v1802_v5 }
 0x5d4   : > { %v931_v55 = vpack.c.bf16 %v880_v53, %v880_v53  ;;  %v924_v56 = vpop.f32.mrf.mxu0  ;;  %1601 = vmatprep.subr.bf16.mxu0 %v1802_v5 }
 0x5d5   : > { %v1562_v57 = vpop.f32.mrf.mxu1  ;;  %v1085_v59 = vpack.c.bf16 %v924_v56, %v924_v56 }
 0x5d6   : > { %v1568_v58 = vpop.f32.mrf.mxu0  ;;  %1572 = vmatmul.mubr.msk.bf16.vlgmr.msra.gmra.mxu1 %vm511_vm4, %v931_v55 }
 0x5d7   : > { %1582 = vmatpush3.bf16.msra.mxu1 %v1680_v54  ;;  %1583 = vmatprep.mubr.msk.bf16.mxu1 %vm1803_vm2, %v1802_v5 }
 0x5d8   : > { %1593 = vmatprep.subr.bf16.mxu1 %v1802_v5 }
 0x5da   : > { %1590 = vmatmul.mubr.msk.bf16.vlgmr.msra.gmra.mxu0 %vm511_vm4, %v1085_v59 }
 0x5db   : > { %1609 = vmatprep.mubr.msk.bf16.mxu0 %vm1803_vm2, %v1802_v5  ;;  %1602 = vmatpush3.bf16.msra.mxu0 %v1683_v35 }
 0x5dc   : > { %1603 = vmatprep.subr.bf16.mxu0 %v1802_v5 }
 0x5de   : > { %1584 = vmatmul.mubr.msk.bf16.vlgmr.msra.gmra.mxu1 %vm511_vm4, %v1032_v60 }
 0x5df   : > { %1597 = vmatprep.mubr.msk.bf16.mxu1 %vm1803_vm2, %v1802_v5  ;;  %1594 = vmatpush3.bf16.msra.mxu1 %v1681_v26 }
 0x5e0   : > { %1595 = vmatprep.subr.bf16.mxu1 %v1802_v5  ;;  %1604 = vmatpush3.bf16.msra.mxu0 %v1684_v36 }
 0x5e1   : > { %1605 = vmatprep.subr.bf16.mxu0 %v1802_v5 }
 0x5e3   : > { %1596 = vmatpush3.bf16.msra.mxu1 %v1682_v25 }
 0x5e4   : > { %1606 = vmatpush3.bf16.msra.mxu0 %v1685_v11 }
 0x5e5   : > { %1607 = vmatprep.subr.bf16.mxu0 %v1802_v5 }
 0x5e8   : > { %1608 = vmatpush3.bf16.msra.mxu0 %v1686_v14 }
 0x692   : > { %v1026_v61 = vpop.f32.mrf.mxu0 }
 0x694   : > { %v1579_v62 = vpop.f32.mrf.mxu0 }
 0x696   : > { %v977_v63 = vpop.f32.mrf.mxu1  ;;  %v1029_v0 = vpop.f32.mrf.mxu0 }
 0x697   : > { %v1027_v9 = vadd.f32 %v1026_v61, %v977_v63 }
 0x698   : > { %v1573_v2 = vpop.f32.mrf.mxu1  ;;  %v1580_v3 = vpop.f32.mrf.mxu0 }
 0x69a   : > { %v980_v4 = vpop.f32.mrf.mxu1  ;;  %v1131_v6 = vpop.f32.mrf.mxu0 }
 0x69c   : > { %v1574_v7 = vpop.f32.mrf.mxu1  ;;  %v1591_v8 = vpop.f32.mrf.mxu0 }
 0x69e   : > { %v1078_v12 = vpop.f32.mrf.mxu1  ;;  %v1134_v13 = vpop.f32.mrf.mxu0 }
 0x69f   : > { %v1084_v15 = vadd.f32 %v1078_v12, %v1027_v9 }
 0x6a0   : > { %v1585_v16 = vpop.f32.mrf.mxu1  ;;  %v1592_v17 = vpop.f32.mrf.mxu0 }
 0x6a1   : > { %v1137_v18 = vadd.f32 %v1131_v6, %v1084_v15 }
 0x6a2   : > { %v1081_v19 = vpop.f32.mrf.mxu1 }
 0x6a3   : > { %v1138_v21 = vadd.f32 %v1137_v18, %v1949_v1 }
 0x6a4   : > { %v1586_v22 = vpop.f32.mrf.mxu1 }
 0x6a5   : > { %1139 = vst.msk [vmem:[%s1946_s19] sm:$0xff] %vm417_vm1, %v1138_v21  ;;  %v1141_v23 = vmul.f32 %v1138_v21, %v1138_v21 }
 0x6a7   : > { %v1142_v24 = vsel %vm417_vm1, %v1141_v23, 0.0 }
 0x6a8   : > { %1143 = vadd.xlane.f32.xlu1 %v1142_v24 }
 0x731   : > { %v1144_v1 = vpop.xlane.xlu1 %1143 }
 0x732   : > { %v1145_v27 = vmul.f32 0.03125, %v1144_v1 }
 0x734   : > { %v1146_v28 = vadd.f32 1e-06, %v1145_v27 }
 0x736   : > { %1705 = vrsqrt.f32 %v1146_v28 }
 0x743   : > { %v1706_v32 = vpop.eup %1705 }
 0x744   : > { %v1148_v33 = vmul.f32 %v1706_v32, %v1138_v21 }
 0x746   : > { %v1156_v34 = vmul.f32 %v1154_v31, %v1148_v33 }
 0x748   : > { %v1157_v20 = vpack.c.bf16 %v1156_v34, %v1156_v34 }
 0x74a   : > { %1598 = vmatmul.mubr.msk.bf16.vlgmr.msra.gmra.mxu1 %vm417_vm1, %v1157_v20 }
 0x80a   : > { %v1211_v37 = vpop.f32.mrf.mxu1 }
 0x80b   : > { %1227 = vrot.lane.b32.xlu0 %v1211_v37, %s1807_s27  ;;  %v1218_v41 = vmul.f32 0.044715, %v1211_v37  ;;  %v1217_v47 = vmul.f32 0.5, %v1211_v37  ;;  %s2241_s27 = sshll.u32 %s1897_s17, 7 }
 0x80c   : > { %v1599_v38 = vpop.f32.mrf.mxu1  ;;  %s1339_s21 = scalar_lea.hbm %s2236_s10, %s2241_s27 }
 0x80d   : > { %v1219_v42 = vmul.f32 %v1218_v41, %v1211_v37 }
 0x80e   : > { %v1214_v39 = vpop.f32.mrf.mxu1 }
 0x80f   : > { %v1220_v43 = vmul.f32 %v1219_v42, %v1211_v37 }
 0x810   : > { %v1600_v40 = vpop.f32.mrf.mxu1 }
 0x811   : > { %v1221_v44 = vadd.f32 %v1220_v43, %v1211_v37 }
 0x813   : > { %v1222_v5 = vmul.f32 0.7978846, %v1221_v44 }
 0x815   : > { %1707 = vtanh.f32 %v1222_v5 }
 0x822   : > { %v1708_v45 = vpop.eup %1707 }
 0x823   : > { %v1224_v46 = vadd.f32 1.0, %v1708_v45 }
 0x825   : > { %v1225_v48 = vmul.f32 %v1224_v46, %v1217_v47 }
 0x87d   : > { %v1228_v49 = vpop.permute.xlu0 %1227 }
 0x87e   : > { %v1230_v50 = vmul.f32 %v1228_v49, %v1225_v48 }
 0x880   : > { %v1231_v51 = vpack.c.bf16 %v1230_v50, %v1230_v50 }
 0x882   : > { %1610 = vmatmul.mubr.msk.bf16.vlgmr.msra.gmra.mxu0 %vm1264_vm7, %v1231_v51 }
 0x883   : > { %1722 = shalt.err (!%p1719_p4)
}
 0x884   : > { %s1723_s11 = scalar_lea.hbm %s1339_s21, 128  ;;  %s1727_s12 = scalar_lea.hbm %s2236_s10, 256 }
 0x885   : > { %p1724_p7 = scmp.ne.s32.totalorder %s1339_s21, %s1723_s11  ;;  %p1728_p10 = scmp.lt.s32.totalorder %s1339_s21, %s2236_s10 }
 0x886   : > { %p1729_p11 = scmp.lt.s32.totalorder %s1727_s12, %s1723_s11 }
 0x887   : > { %p1725_p8 = pnand %p1724_p7, %p1914_p5 }
 0x888   : > { %p1730_p12 = por %p1729_p11, %p1728_p10 }
 0x889   : > { %p1726_p9 = pneg %p1725_p8 }
 0x88b   : > { %p1731_p13 = pnand %p1730_p12, %p1726_p9 }
 0x88d   : > { %1734 = shalt.err (!%p1731_p13)
}
 0x88e   : > { %1614 = dma.vmem_to_hbm [thread:$0]  (%p1914_p5), %s1342_s15, 128, %s1339_s21, %s1315_s28  }
 0x88f   : > { %s1328_s22 = sshll.u32 %s1944_s14, 4  ;;  %s2248_s26 = sshll.u32 %s1897_s17, 7  ;;  %s2184_s22 = int_to_ptr.vmem [resolvable:$true] %s1328_s22 }
 0x890   : > { %s2182_s19 = scalar_lea.hbm %s2235_s9, %s2248_s26  ;;  %s1310_s27 = scalar_lea.sflag [#allocation6], %s1925_s25 }
 0x891   : > { %s1735_s11 = scalar_lea.vmem %s2184_s22, 128  ;;  %s1820_s17 = smov [#allocation5]  }
 0x892   : > { %p1736_p0 = scmp.ne.s32.totalorder %s2184_s22, %s1735_s11  ;;  %s1739_s21 = sshll.u32 %s1820_s17, 4  ;;  %s1740_s21 = int_to_ptr.vmem [resolvable:$false] %s1739_s21 }
 0x893   : > { %s1741_s15 = scalar_lea.vmem %s1740_s21, 256  ;;  %p1742_p3 = scmp.lt.s32.totalorder %s2184_s22, %s1740_s21 }
 0x894   : > { %p1737_p1 = pnand %p1736_p0, %p1914_p5  ;;  %p1743_p4 = scmp.lt.s32.totalorder %s1741_s15, %s1735_s11 }
 0x896   : > { %p1738_p2 = pneg %p1737_p1  ;;  %p1744_p7 = por %p1743_p4, %p1742_p3 }
 0x898   : > { %p1745_p8 = pnand %p1744_p7, %p1738_p2 }
 0x942   : > { %v1302_v52 = vpop.f32.mrf.mxu0 }
 0x943   : > { %1308 = vst.msk [vmem:[%s1944_s14] sm:$0xff] %vm417_vm1, %v1302_v52 }
 0x944   : > { %v1611_v10 = vpop.f32.mrf.mxu0 }
 0x945   : > { %1748 = shalt.err (!%p1745_p8)
}
 0x946   : > { %s1749_s14 = scalar_lea.hbm %s2182_s19, 128  ;;  %s1753_s20 = scalar_lea.hbm %s2235_s9, 256 }
 0x947   : > { %p1750_p9 = scmp.ne.s32.totalorder %s2182_s19, %s1749_s14  ;;  %p1754_p12 = scmp.lt.s32.totalorder %s2182_s19, %s2235_s9 }
 0x948   : > { %p1755_p13 = scmp.lt.s32.totalorder %s1753_s20, %s1749_s14 }
 0x949   : > { %p1751_p10 = pnand %p1750_p9, %p1914_p5 }
 0x94a   : > { %p1756_p0 = por %p1755_p13, %p1754_p12 }
 0x94b   : > { %p1752_p11 = pneg %p1751_p10 }
 0x94d   : > { %p1757_p1 = pnand %p1756_p0, %p1752_p11 }
 0x94f   : > { %1760 = shalt.err (!%p1757_p1)
}
 0x950   : > { %1613 = dma.vmem_to_hbm [thread:$0]  (%p1914_p5), %s2184_s22, 128, %s2182_s19, %s1310_s27   ;;  %v1305_v53 = vpop.f32.mrf.mxu0 }
 0x952   : > { %v1612_v54 = vpop.f32.mrf.mxu0 }
 0x953 PF: > { %p1624_p2 = scmp.ge.s32.totalorder %s1799_s16, 2  ;;  %s1353_s26 = sand.u32 1, %s1787_s13  }
 0x954   : > { %s1354_s29 = scalar_lea.sflag [#allocation6], %s1353_s26 }
 0x955   : > { %p1618_p3 = pnand %p1624_p2, %p1918_p6 }
 0x957   : > { %p1619_p4 = pneg %p1618_p3 }
 0x959   : > { %1778 = dma.done.wait (%p1619_p4), %s1354_s29, 128  }
 0x95a   : > { %1780 = vsyncadd (%p1619_p4), %s1354_s29, 4294967168  ;;  %s1363_s30 = scalar_lea.sflag [#allocation8], %s1353_s26 }
 0x95b   : > { %1782 = dma.done.wait (%p1619_p4), %s1363_s30, 128  }
 0x95c   : > { %1784 = vsyncadd (%p1619_p4), %s1363_s30, 4294967168  ;;  %s2249_s16 = sld [smem:[#allocation13_spill]] }
 0x95d   : > { %s2250_s13 = sld [smem:[#allocation11_spill]] }
 0x95e   : > { %s2251_s14 = sld [smem:[#allocation12_spill]] }
 0x95f   : > { %s2252_s15 = sld [smem:[#allocation14_spill]] }
 0x962   : > { %p24_p5 = scmp.ge.s32.totalorder %s2249_s16, 4  }
 0x964   :  { %26 = sbr.rel (!%p24_p5) target bundleno = 5 (0x5), region = 123 }
 0x969   :  { %1368 = vsyncpa [#allocation6], 1 }
 0x96a   :  { %1370 = vsyncpa [#allocation6 + $0x1], 1 }
 0x96b   :  { %1371 = vsyncpa [#allocation8], 1 }
 0x96c   :  { %1373 = vsyncpa [#allocation8 + $0x1], 1 }

</bundles_post_ra>
